<compile_context>
chip_gen: v7x
topology: tpu7x:2x2x1
jax: 0.10.0
libtpu: 0.0.40
codegen_flags: <defaults>
</compile_context>

<pallas_src>
import math

import jax
import jax.numpy as jnp
from jax import lax
from jax.experimental import pallas as pl
from jax.experimental.pallas import tpu as pltpu  # noqa: F401  (kept for parity / future tiling)

# ----- small synthetic KoBERT config (hidden_size analog of 768 -> 32) -----
BATCH = 2
SEQ = 8
HIDDEN = 32
NUM_HEADS = 2
HEAD_DIM = HIDDEN // NUM_HEADS
FFN = 64
NUM_LAYERS = 2
VOCAB = 100
TYPE_VOCAB = 2
MAX_POS = 16
NUM_CLASSES = 2
LN_EPS = 1e-12
PAD_C = 128          # lane-dense classifier width; real classes live in [:NUM_CLASSES]


# --------------------------- in-kernel helpers ---------------------------

def _layernorm(x, g, b):
    mu = jnp.mean(x, axis=-1, keepdims=True)
    var = jnp.mean(jnp.square(x - mu), axis=-1, keepdims=True)
    return (x - mu) * lax.rsqrt(var + LN_EPS) * g + b


def _softmax_rows(s, approx):
    s = s - jnp.max(s, axis=-1, keepdims=True)
    e = jnp.exp(s)
    return e * pl.reciprocal(jnp.sum(e, axis=-1, keepdims=True), approx=approx)


# --------------------------- fused kernel (single invocation, no grid) ---------------------------

def _kobert_fused_kernel(
    # inputs
    h_emb_ref, mask_ref, eg_ref, eb_ref,
    wqkv_ref, bqkv_ref, wo_ref, bo_ref, ln1_g_ref, ln1_b_ref,
    w1_ref, b1_ref, w2_ref, b2_ref, ln2_g_ref, ln2_b_ref,
    pw_ref, pb_ref, cw_ref, cb_ref,
    # output
    out_ref,
):
    # ---- embeddings LayerNorm ----
    h = _layernorm(h_emb_ref[...], eg_ref[...], eb_ref[...])   # (B*S, H), carried in vregs
    mask_add = mask_ref[...]                                   # (B*S, B*S) block-diag + key-pad

    # ---- encoder layers: static unroll, weights read once each, h carried as a value ----
    for l in range(NUM_LAYERS):
        # fused QKV projection: one MXU pass, lane width 3*HIDDEN.
        # 1/sqrt(head_dim) is already folded into the q columns on the host.
        qkv = jnp.dot(h, wqkv_ref[l], preferred_element_type=jnp.float32) + bqkv_ref[l]
        q = qkv[:, 0 * HIDDEN:1 * HIDDEN]
        k = qkv[:, 1 * HIDDEN:2 * HIDDEN]
        v = qkv[:, 2 * HIDDEN:3 * HIDDEN]

        # self-attention per head; contexts stay in registers (no scratch stores).
        ctx_parts = []
        for hd in range(NUM_HEADS):
            sl = slice(hd * HEAD_DIM, (hd + 1) * HEAD_DIM)
            s = lax.dot_general(q[:, sl], k[:, sl], (((1,), (1,)), ((), ())),
                                preferred_element_type=jnp.float32)
            p = _softmax_rows(s + mask_add, approx=True)
            ctx_parts.append(jnp.dot(p, v[:, sl], preferred_element_type=jnp.float32))
        ctx = jnp.concatenate(ctx_parts, axis=-1)

        # attention output projection + residual + LayerNorm (fused)
        attn_out = jnp.dot(ctx, wo_ref[l], preferred_element_type=jnp.float32) + bo_ref[l]
        h = _layernorm(attn_out + h, ln1_g_ref[l], ln1_b_ref[l])

        # FFN + residual + LayerNorm (fused)
        ff = jnp.dot(h, w1_ref[l], preferred_element_type=jnp.float32) + b1_ref[l]
        # TODO(synk): HF/PyTorch BERT default is exact erf GELU; tanh approximation kept here.
        ff = jax.nn.gelu(ff, approximate=True)
        ff = jnp.dot(ff, w2_ref[l], preferred_element_type=jnp.float32) + b2_ref[l]
        h = _layernorm(ff + h, ln2_g_ref[l], ln2_b_ref[l])

    # ---- head: pooler -> dropout(identity) -> classifier -> softmax, lane-dense store ----
    # Head is computed on all B*S rows (trivial extra MXU work) so the single output store is
    # a dense (B*S, 128) tile; the wrapper slices out the CLS rows and the real classes.
    pooled = jnp.tanh(
        jnp.dot(h, pw_ref[...], preferred_element_type=jnp.float32) + pb_ref[...])
    # TODO(synk): nn.Dropout(p=0.3) is the identity at inference time.
    logits = jnp.dot(pooled, cw_ref[...], preferred_element_type=jnp.float32) + cb_ref[...]
    out_ref[...] = _softmax_rows(logits, approx=False)   # padded classes -> prob exactly 0


# --------------------------- parameters ---------------------------

def init_params(key):
    def nrm(k, shape, scale=0.02):
        return scale * jax.random.normal(k, shape, dtype=jnp.float32)

    keys = iter(jax.random.split(key, 32))
    L = NUM_LAYERS
    return {
        "word_emb": nrm(next(keys), (VOCAB, HIDDEN)),
        "pos_emb": nrm(next(keys), (MAX_POS, HIDDEN)),
        "type_emb": nrm(next(keys), (TYPE_VOCAB, HIDDEN)),
        "emb_ln_g": jnp.ones((1, HIDDEN), jnp.float32),
        "emb_ln_b": jnp.zeros((1, HIDDEN), jnp.float32),
        # per-layer weights stacked on a leading layer axis; wq|wk|wv fused into one matrix.
        "wqkv": nrm(next(keys), (L, HIDDEN, 3 * HIDDEN)),
        "bqkv": jnp.zeros((L, 1, 3 * HIDDEN), jnp.float32),
        "wo": nrm(next(keys), (L, HIDDEN, HIDDEN)),
        "bo": jnp.zeros((L, 1, HIDDEN), jnp.float32),
        "ln1_g": jnp.ones((L, 1, HIDDEN), jnp.float32),
        "ln1_b": jnp.zeros((L, 1, HIDDEN), jnp.float32),
        "w1": nrm(next(keys), (L, HIDDEN, FFN)),
        "b1": jnp.zeros((L, 1, FFN), jnp.float32),
        "w2": nrm(next(keys), (L, FFN, HIDDEN)),
        "b2": jnp.zeros((L, 1, HIDDEN), jnp.float32),
        "ln2_g": jnp.ones((L, 1, HIDDEN), jnp.float32),
        "ln2_b": jnp.zeros((L, 1, HIDDEN), jnp.float32),
        "pooler_w": nrm(next(keys), (HIDDEN, HIDDEN)),
        "pooler_b": jnp.zeros((1, HIDDEN), jnp.float32),
        "cls_w": nrm(next(keys), (HIDDEN, NUM_CLASSES)),
        "cls_b": jnp.zeros((NUM_CLASSES,), jnp.float32),
    }


# --------------------------- forward ---------------------------

def kobert_classifier_forward(params, input_ids, attention_mask, token_type_ids):
    B, S = input_ids.shape

    # Embedding gathers (plain JAX glue), flattened to one (B*S, H) activation slab.
    h_emb = (jnp.take(params["word_emb"], input_ids, axis=0)
             + params["pos_emb"][None, :S, :]
             + jnp.take(params["type_emb"], token_type_ids, axis=0))
    h_emb = h_emb.reshape(B * S, HIDDEN).astype(jnp.float32)

    # Block-diagonal additive mask: batch separation + key padding, computed once,
    # reused by every layer / head. allowed[b*S+i, b2*S+j] = (b == b2) & attention_mask[b2, j].
    key_ok = attention_mask.astype(jnp.float32)                                  # (B, S)
    allowed = jnp.eye(B, dtype=jnp.float32)[:, :, None] * key_ok[None, :, :]     # (B, B, S)
    allowed = jnp.broadcast_to(allowed[:, None, :, :], (B, S, B, S)).reshape(B * S, B * S)
    mask_add = (1.0 - allowed) * (-1e9)

    # Fold the 1/sqrt(head_dim) attention scale into the q slice of the fused QKV params.
    scale = 1.0 / math.sqrt(HEAD_DIM)
    wqkv = params["wqkv"].at[:, :, :HIDDEN].multiply(scale)
    bqkv = params["bqkv"].at[:, :, :HIDDEN].multiply(scale)

    # Lane-dense padded classifier: real classes in [:NUM_CLASSES], padded columns get a
    # -1e30 bias so their softmax probability is exactly 0.
    cls_w_pad = jnp.zeros((HIDDEN, PAD_C), jnp.float32).at[:, :NUM_CLASSES].set(params["cls_w"])
    cls_b_pad = jnp.full((1, PAD_C), -1e30, jnp.float32).at[0, :NUM_CLASSES].set(params["cls_b"])

    # Single invocation, no grid: all operands are full-array VMEM blocks, fetched once.
    probs_full = pl.pallas_call(
        _kobert_fused_kernel,
        out_shape=jax.ShapeDtypeStruct((B * S, PAD_C), jnp.float32),
    )(
        h_emb, mask_add, params["emb_ln_g"], params["emb_ln_b"],
        wqkv, bqkv, params["wo"], params["bo"],
        params["ln1_g"], params["ln1_b"],
        params["w1"], params["b1"], params["w2"], params["b2"],
        params["ln2_g"], params["ln2_b"],
        params["pooler_w"], params["pooler_b"], cls_w_pad, cls_b_pad,
    )

    # CLS row of each batch element, real classes only.
    return probs_full.reshape(B, S, PAD_C)[:, 0, :NUM_CLASSES]


if __name__ == "__main__":
    key = jax.random.PRNGKey(0)
    pkey, ikey = jax.random.split(key)
    params = init_params(pkey)

    input_ids = jax.random.randint(ikey, (BATCH, SEQ), 0, VOCAB, dtype=jnp.int32)
    attention_mask = jnp.ones((BATCH, SEQ), dtype=jnp.int32).at[1, 6:].set(0)
    token_type_ids = jnp.zeros((BATCH, SEQ), dtype=jnp.int32)

    fwd = jax.jit(kobert_classifier_forward)
    probs = fwd(params, input_ids, attention_mask, token_type_ids)
    probs = jax.block_until_ready(probs)

    assert probs.shape == (BATCH, NUM_CLASSES)
    assert bool(jnp.all(jnp.isfinite(probs)))
    assert jnp.allclose(jnp.sum(probs, axis=1), 1.0, atol=1e-5)
    print("KERNEL_OK")
</pallas_src>

<mosaic_0001>
module attributes {stable_mosaic.version = 11 : i64} {
  func.func @_kobert_fused_kernel(%arg0: memref<16x32xf32, #tpu.memory_space<vmem>>, %arg1: memref<16x16xf32, #tpu.memory_space<vmem>>, %arg2: memref<1x32xf32, #tpu.memory_space<vmem>>, %arg3: memref<1x32xf32, #tpu.memory_space<vmem>>, %arg4: memref<2x32x96xf32, #tpu.memory_space<vmem>>, %arg5: memref<2x1x96xf32, #tpu.memory_space<vmem>>, %arg6: memref<2x32x32xf32, #tpu.memory_space<vmem>>, %arg7: memref<2x1x32xf32, #tpu.memory_space<vmem>>, %arg8: memref<2x1x32xf32, #tpu.memory_space<vmem>>, %arg9: memref<2x1x32xf32, #tpu.memory_space<vmem>>, %arg10: memref<2x32x64xf32, #tpu.memory_space<vmem>>, %arg11: memref<2x1x64xf32, #tpu.memory_space<vmem>>, %arg12: memref<2x64x32xf32, #tpu.memory_space<vmem>>, %arg13: memref<2x1x32xf32, #tpu.memory_space<vmem>>, %arg14: memref<2x1x32xf32, #tpu.memory_space<vmem>>, %arg15: memref<2x1x32xf32, #tpu.memory_space<vmem>>, %arg16: memref<32x32xf32, #tpu.memory_space<vmem>>, %arg17: memref<1x32xf32, #tpu.memory_space<vmem>>, %arg18: memref<32x128xf32, #tpu.memory_space<vmem>>, %arg19: memref<1x128xf32, #tpu.memory_space<vmem>>, %arg20: memref<16x128xf32, #tpu.memory_space<vmem>>) attributes {dimension_semantics = [], scalar_prefetch = 0 : i64, scratch_operands = 0 : i64, tpu.core_type = #tpu.core_type<tc>} {
    %c0 = arith.constant 0 : index
    %c0_0 = arith.constant 0 : index
    %0 = vector.load %arg0[%c0, %c0_0] : memref<16x32xf32, #tpu.memory_space<vmem>>, vector<16x32xf32>
    %c0_1 = arith.constant 0 : index
    %c0_2 = arith.constant 0 : index
    %1 = vector.load %arg2[%c0_1, %c0_2] : memref<1x32xf32, #tpu.memory_space<vmem>>, vector<1x32xf32>
    %c0_3 = arith.constant 0 : index
    %c0_4 = arith.constant 0 : index
    %2 = vector.load %arg3[%c0_3, %c0_4] : memref<1x32xf32, #tpu.memory_space<vmem>>, vector<1x32xf32>
    %cst = arith.constant dense<0.000000e+00> : vector<16xf32>
    %3 = vector.multi_reduction <add>, %0, %cst [1] : vector<16x32xf32> to vector<16xf32>
    %4 = vector.shape_cast %3 : vector<16xf32> to vector<16x1xf32>
    %cst_5 = arith.constant 3.200000e+01 : f32
    %5 = vector.broadcast %cst_5 : f32 to vector<16x1xf32>
    %6 = arith.divf %4, %5 : vector<16x1xf32>
    %7 = vector.broadcast %6 : vector<16x1xf32> to vector<16x32xf32>
    %8 = arith.subf %0, %7 : vector<16x32xf32>
    %9 = arith.mulf %8, %8 : vector<16x32xf32>
    %cst_6 = arith.constant dense<0.000000e+00> : vector<16xf32>
    %10 = vector.multi_reduction <add>, %9, %cst_6 [1] : vector<16x32xf32> to vector<16xf32>
    %11 = vector.shape_cast %10 : vector<16xf32> to vector<16x1xf32>
    %cst_7 = arith.constant 3.200000e+01 : f32
    %12 = vector.broadcast %cst_7 : f32 to vector<16x1xf32>
    %13 = arith.divf %11, %12 : vector<16x1xf32>
    %14 = vector.broadcast %6 : vector<16x1xf32> to vector<16x32xf32>
    %15 = arith.subf %0, %14 : vector<16x32xf32>
    %cst_8 = arith.constant 9.99999996E-13 : f32
    %16 = vector.broadcast %cst_8 : f32 to vector<16x1xf32>
    %17 = arith.addf %13, %16 : vector<16x1xf32>
    %18 = math.rsqrt %17 : vector<16x1xf32>
    %19 = vector.broadcast %18 : vector<16x1xf32> to vector<16x32xf32>
    %20 = arith.mulf %15, %19 : vector<16x32xf32>
    %21 = vector.broadcast %1 : vector<1x32xf32> to vector<16x32xf32>
    %22 = arith.mulf %20, %21 : vector<16x32xf32>
    %23 = vector.broadcast %2 : vector<1x32xf32> to vector<16x32xf32>
    %24 = arith.addf %22, %23 : vector<16x32xf32>
    %c0_9 = arith.constant 0 : index
    %c0_10 = arith.constant 0 : index
    %25 = vector.load %arg1[%c0_9, %c0_10] : memref<16x16xf32, #tpu.memory_space<vmem>>, vector<16x16xf32>
    %c0_11 = arith.constant 0 : index
    %c0_12 = arith.constant 0 : index
    %c0_13 = arith.constant 0 : index
    %26 = vector.load %arg4[%c0_11, %c0_12, %c0_13] : memref<2x32x96xf32, #tpu.memory_space<vmem>>, vector<1x32x96xf32>
    %27 = vector.shape_cast %26 : vector<1x32x96xf32> to vector<32x96xf32>
    %cst_14 = arith.constant dense<0.000000e+00> : vector<16x96xf32>
    %28 = tpu.matmul %24, %27, %cst_14 {dimension_numbers = #tpu.dot_dimension_numbers<[1], [0], [0], [1], [0, 0, 1, 1], [], []>} : vector<16x32xf32>, vector<32x96xf32>, vector<16x96xf32> -> vector<16x96xf32>
    %c0_15 = arith.constant 0 : index
    %c0_16 = arith.constant 0 : index
    %c0_17 = arith.constant 0 : index
    %29 = vector.load %arg5[%c0_15, %c0_16, %c0_17] : memref<2x1x96xf32, #tpu.memory_space<vmem>>, vector<1x1x96xf32>
    %30 = vector.shape_cast %29 : vector<1x1x96xf32> to vector<1x96xf32>
    %31 = vector.broadcast %30 : vector<1x96xf32> to vector<16x96xf32>
    %32 = arith.addf %28, %31 : vector<16x96xf32>
    %33 = vector.extract_strided_slice %32 {offsets = [0, 0], sizes = [16, 32], strides = [1, 1]} : vector<16x96xf32> to vector<16x32xf32>
    %34 = vector.extract_strided_slice %32 {offsets = [0, 32], sizes = [16, 32], strides = [1, 1]} : vector<16x96xf32> to vector<16x32xf32>
    %35 = vector.extract_strided_slice %32 {offsets = [0, 64], sizes = [16, 32], strides = [1, 1]} : vector<16x96xf32> to vector<16x32xf32>
    %36 = vector.extract_strided_slice %33 {offsets = [0, 0], sizes = [16, 16], strides = [1, 1]} : vector<16x32xf32> to vector<16x16xf32>
    %37 = vector.extract_strided_slice %34 {offsets = [0, 0], sizes = [16, 16], strides = [1, 1]} : vector<16x32xf32> to vector<16x16xf32>
    %cst_18 = arith.constant dense<0.000000e+00> : vector<16x16xf32>
    %38 = tpu.matmul %36, %37, %cst_18 {dimension_numbers = #tpu.dot_dimension_numbers<[1], [1], [0], [0], [0, 0, 1, 0], [], []>} : vector<16x16xf32>, vector<16x16xf32>, vector<16x16xf32> -> vector<16x16xf32>
    %39 = arith.addf %38, %25 : vector<16x16xf32>
    %cst_19 = arith.constant dense<0xFF800000> : vector<16xf32>
    %40 = vector.multi_reduction <maximumf>, %39, %cst_19 [1] : vector<16x16xf32> to vector<16xf32>
    %41 = vector.shape_cast %40 : vector<16xf32> to vector<16x1xf32>
    %42 = vector.broadcast %41 : vector<16x1xf32> to vector<16x16xf32>
    %43 = arith.subf %39, %42 : vector<16x16xf32>
    %44 = math.exp %43 : vector<16x16xf32>
    %cst_20 = arith.constant dense<0.000000e+00> : vector<16xf32>
    %45 = vector.multi_reduction <add>, %44, %cst_20 [1] : vector<16x16xf32> to vector<16xf32>
    %46 = vector.shape_cast %45 : vector<16xf32> to vector<16x1xf32>
    %47 = tpu.reciprocal %46 {approx = true} : vector<16x1xf32> -> vector<16x1xf32>
    %48 = vector.broadcast %47 : vector<16x1xf32> to vector<16x16xf32>
    %49 = arith.mulf %44, %48 : vector<16x16xf32>
    %50 = vector.extract_strided_slice %35 {offsets = [0, 0], sizes = [16, 16], strides = [1, 1]} : vector<16x32xf32> to vector<16x16xf32>
    %cst_21 = arith.constant dense<0.000000e+00> : vector<16x16xf32>
    %51 = tpu.matmul %49, %50, %cst_21 {dimension_numbers = #tpu.dot_dimension_numbers<[1], [0], [0], [1], [0, 0, 1, 1], [], []>} : vector<16x16xf32>, vector<16x16xf32>, vector<16x16xf32> -> vector<16x16xf32>
    %52 = vector.extract_strided_slice %33 {offsets = [0, 16], sizes = [16, 16], strides = [1, 1]} : vector<16x32xf32> to vector<16x16xf32>
    %53 = vector.extract_strided_slice %34 {offsets = [0, 16], sizes = [16, 16], strides = [1, 1]} : vector<16x32xf32> to vector<16x16xf32>
    %cst_22 = arith.constant dense<0.000000e+00> : vector<16x16xf32>
    %54 = tpu.matmul %52, %53, %cst_22 {dimension_numbers = #tpu.dot_dimension_numbers<[1], [1], [0], [0], [0, 0, 1, 0], [], []>} : vector<16x16xf32>, vector<16x16xf32>, vector<16x16xf32> -> vector<16x16xf32>
    %55 = arith.addf %54, %25 : vector<16x16xf32>
    %cst_23 = arith.constant dense<0xFF800000> : vector<16xf32>
    %56 = vector.multi_reduction <maximumf>, %55, %cst_23 [1] : vector<16x16xf32> to vector<16xf32>
    %57 = vector.shape_cast %56 : vector<16xf32> to vector<16x1xf32>
    %58 = vector.broadcast %57 : vector<16x1xf32> to vector<16x16xf32>
    %59 = arith.subf %55, %58 : vector<16x16xf32>
    %60 = math.exp %59 : vector<16x16xf32>
    %cst_24 = arith.constant dense<0.000000e+00> : vector<16xf32>
    %61 = vector.multi_reduction <add>, %60, %cst_24 [1] : vector<16x16xf32> to vector<16xf32>
    %62 = vector.shape_cast %61 : vector<16xf32> to vector<16x1xf32>
    %63 = tpu.reciprocal %62 {approx = true} : vector<16x1xf32> -> vector<16x1xf32>
    %64 = vector.broadcast %63 : vector<16x1xf32> to vector<16x16xf32>
    %65 = arith.mulf %60, %64 : vector<16x16xf32>
    %66 = vector.extract_strided_slice %35 {offsets = [0, 16], sizes = [16, 16], strides = [1, 1]} : vector<16x32xf32> to vector<16x16xf32>
    %cst_25 = arith.constant dense<0.000000e+00> : vector<16x16xf32>
    %67 = tpu.matmul %65, %66, %cst_25 {dimension_numbers = #tpu.dot_dimension_numbers<[1], [0], [0], [1], [0, 0, 1, 1], [], []>} : vector<16x16xf32>, vector<16x16xf32>, vector<16x16xf32> -> vector<16x16xf32>
    %68 = tpu.concatenate %51, %67 in 1 : vector<16x16xf32>, vector<16x16xf32> -> vector<16x32xf32>
    %c0_26 = arith.constant 0 : index
    %c0_27 = arith.constant 0 : index
    %c0_28 = arith.constant 0 : index
    %69 = vector.load %arg6[%c0_26, %c0_27, %c0_28] : memref<2x32x32xf32, #tpu.memory_space<vmem>>, vector<1x32x32xf32>
    %70 = vector.shape_cast %69 : vector<1x32x32xf32> to vector<32x32xf32>
    %cst_29 = arith.constant dense<0.000000e+00> : vector<16x32xf32>
    %71 = tpu.matmul %68, %70, %cst_29 {dimension_numbers = #tpu.dot_dimension_numbers<[1], [0], [0], [1], [0, 0, 1, 1], [], []>} : vector<16x32xf32>, vector<32x32xf32>, vector<16x32xf32> -> vector<16x32xf32>
    %c0_30 = arith.constant 0 : index
    %c0_31 = arith.constant 0 : index
    %c0_32 = arith.constant 0 : index
    %72 = vector.load %arg7[%c0_30, %c0_31, %c0_32] : memref<2x1x32xf32, #tpu.memory_space<vmem>>, vector<1x1x32xf32>
    %73 = vector.shape_cast %72 : vector<1x1x32xf32> to vector<1x32xf32>
    %74 = vector.broadcast %73 : vector<1x32xf32> to vector<16x32xf32>
    %75 = arith.addf %71, %74 : vector<16x32xf32>
    %76 = arith.addf %75, %24 : vector<16x32xf32>
    %c0_33 = arith.constant 0 : index
    %c0_34 = arith.constant 0 : index
    %c0_35 = arith.constant 0 : index
    %77 = vector.load %arg8[%c0_33, %c0_34, %c0_35] : memref<2x1x32xf32, #tpu.memory_space<vmem>>, vector<1x1x32xf32>
    %78 = vector.shape_cast %77 : vector<1x1x32xf32> to vector<1x32xf32>
    %c0_36 = arith.constant 0 : index
    %c0_37 = arith.constant 0 : index
    %c0_38 = arith.constant 0 : index
    %79 = vector.load %arg9[%c0_36, %c0_37, %c0_38] : memref<2x1x32xf32, #tpu.memory_space<vmem>>, vector<1x1x32xf32>
    %80 = vector.shape_cast %79 : vector<1x1x32xf32> to vector<1x32xf32>
    %cst_39 = arith.constant dense<0.000000e+00> : vector<16xf32>
    %81 = vector.multi_reduction <add>, %76, %cst_39 [1] : vector<16x32xf32> to vector<16xf32>
    %82 = vector.shape_cast %81 : vector<16xf32> to vector<16x1xf32>
    %cst_40 = arith.constant 3.200000e+01 : f32
    %83 = vector.broadcast %cst_40 : f32 to vector<16x1xf32>
    %84 = arith.divf %82, %83 : vector<16x1xf32>
    %85 = vector.broadcast %84 : vector<16x1xf32> to vector<16x32xf32>
    %86 = arith.subf %76, %85 : vector<16x32xf32>
    %87 = arith.mulf %86, %86 : vector<16x32xf32>
    %cst_41 = arith.constant dense<0.000000e+00> : vector<16xf32>
    %88 = vector.multi_reduction <add>, %87, %cst_41 [1] : vector<16x32xf32> to vector<16xf32>
    %89 = vector.shape_cast %88 : vector<16xf32> to vector<16x1xf32>
    %cst_42 = arith.constant 3.200000e+01 : f32
    %90 = vector.broadcast %cst_42 : f32 to vector<16x1xf32>
    %91 = arith.divf %89, %90 : vector<16x1xf32>
    %92 = vector.broadcast %84 : vector<16x1xf32> to vector<16x32xf32>
    %93 = arith.subf %76, %92 : vector<16x32xf32>
    %cst_43 = arith.constant 9.99999996E-13 : f32
    %94 = vector.broadcast %cst_43 : f32 to vector<16x1xf32>
    %95 = arith.addf %91, %94 : vector<16x1xf32>
    %96 = math.rsqrt %95 : vector<16x1xf32>
    %97 = vector.broadcast %96 : vector<16x1xf32> to vector<16x32xf32>
    %98 = arith.mulf %93, %97 : vector<16x32xf32>
    %99 = vector.broadcast %78 : vector<1x32xf32> to vector<16x32xf32>
    %100 = arith.mulf %98, %99 : vector<16x32xf32>
    %101 = vector.broadcast %80 : vector<1x32xf32> to vector<16x32xf32>
    %102 = arith.addf %100, %101 : vector<16x32xf32>
    %c0_44 = arith.constant 0 : index
    %c0_45 = arith.constant 0 : index
    %c0_46 = arith.constant 0 : index
    %103 = vector.load %arg10[%c0_44, %c0_45, %c0_46] : memref<2x32x64xf32, #tpu.memory_space<vmem>>, vector<1x32x64xf32>
    %104 = vector.shape_cast %103 : vector<1x32x64xf32> to vector<32x64xf32>
    %cst_47 = arith.constant dense<0.000000e+00> : vector<16x64xf32>
    %105 = tpu.matmul %102, %104, %cst_47 {dimension_numbers = #tpu.dot_dimension_numbers<[1], [0], [0], [1], [0, 0, 1, 1], [], []>} : vector<16x32xf32>, vector<32x64xf32>, vector<16x64xf32> -> vector<16x64xf32>
    %c0_48 = arith.constant 0 : index
    %c0_49 = arith.constant 0 : index
    %c0_50 = arith.constant 0 : index
    %106 = vector.load %arg11[%c0_48, %c0_49, %c0_50] : memref<2x1x64xf32, #tpu.memory_space<vmem>>, vector<1x1x64xf32>
    %107 = vector.shape_cast %106 : vector<1x1x64xf32> to vector<1x64xf32>
    %108 = vector.broadcast %107 : vector<1x64xf32> to vector<16x64xf32>
    %109 = arith.addf %105, %108 : vector<16x64xf32>
    %110 = arith.mulf %109, %109 : vector<16x64xf32>
    %111 = arith.mulf %109, %110 : vector<16x64xf32>
    %cst_51 = arith.constant 4.471500e-02 : f32
    %112 = vector.broadcast %cst_51 : f32 to vector<16x64xf32>
    %113 = arith.mulf %112, %111 : vector<16x64xf32>
    %114 = arith.addf %109, %113 : vector<16x64xf32>
    %cst_52 = arith.constant 0.797884583 : f32
    %115 = vector.broadcast %cst_52 : f32 to vector<16x64xf32>
    %116 = arith.mulf %115, %114 : vector<16x64xf32>
    %117 = math.tanh %116 : vector<16x64xf32>
    %cst_53 = arith.constant 1.000000e+00 : f32
    %118 = vector.broadcast %cst_53 : f32 to vector<16x64xf32>
    %119 = arith.addf %118, %117 : vector<16x64xf32>
    %cst_54 = arith.constant 5.000000e-01 : f32
    %120 = vector.broadcast %cst_54 : f32 to vector<16x64xf32>
    %121 = arith.mulf %120, %119 : vector<16x64xf32>
    %122 = arith.mulf %109, %121 : vector<16x64xf32>
    %c0_55 = arith.constant 0 : index
    %c0_56 = arith.constant 0 : index
    %c0_57 = arith.constant 0 : index
    %123 = vector.load %arg12[%c0_55, %c0_56, %c0_57] : memref<2x64x32xf32, #tpu.memory_space<vmem>>, vector<1x64x32xf32>
    %124 = vector.shape_cast %123 : vector<1x64x32xf32> to vector<64x32xf32>
    %cst_58 = arith.constant dense<0.000000e+00> : vector<16x32xf32>
    %125 = tpu.matmul %122, %124, %cst_58 {dimension_numbers = #tpu.dot_dimension_numbers<[1], [0], [0], [1], [0, 0, 1, 1], [], []>} : vector<16x64xf32>, vector<64x32xf32>, vector<16x32xf32> -> vector<16x32xf32>
    %c0_59 = arith.constant 0 : index
    %c0_60 = arith.constant 0 : index
    %c0_61 = arith.constant 0 : index
    %126 = vector.load %arg13[%c0_59, %c0_60, %c0_61] : memref<2x1x32xf32, #tpu.memory_space<vmem>>, vector<1x1x32xf32>
    %127 = vector.shape_cast %126 : vector<1x1x32xf32> to vector<1x32xf32>
    %128 = vector.broadcast %127 : vector<1x32xf32> to vector<16x32xf32>
    %129 = arith.addf %125, %128 : vector<16x32xf32>
    %130 = arith.addf %129, %102 : vector<16x32xf32>
    %c0_62 = arith.constant 0 : index
    %c0_63 = arith.constant 0 : index
    %c0_64 = arith.constant 0 : index
    %131 = vector.load %arg14[%c0_62, %c0_63, %c0_64] : memref<2x1x32xf32, #tpu.memory_space<vmem>>, vector<1x1x32xf32>
    %132 = vector.shape_cast %131 : vector<1x1x32xf32> to vector<1x32xf32>
    %c0_65 = arith.constant 0 : index
    %c0_66 = arith.constant 0 : index
    %c0_67 = arith.constant 0 : index
    %133 = vector.load %arg15[%c0_65, %c0_66, %c0_67] : memref<2x1x32xf32, #tpu.memory_space<vmem>>, vector<1x1x32xf32>
    %134 = vector.shape_cast %133 : vector<1x1x32xf32> to vector<1x32xf32>
    %cst_68 = arith.constant dense<0.000000e+00> : vector<16xf32>
    %135 = vector.multi_reduction <add>, %130, %cst_68 [1] : vector<16x32xf32> to vector<16xf32>
    %136 = vector.shape_cast %135 : vector<16xf32> to vector<16x1xf32>
    %cst_69 = arith.constant 3.200000e+01 : f32
    %137 = vector.broadcast %cst_69 : f32 to vector<16x1xf32>
    %138 = arith.divf %136, %137 : vector<16x1xf32>
    %139 = vector.broadcast %138 : vector<16x1xf32> to vector<16x32xf32>
    %140 = arith.subf %130, %139 : vector<16x32xf32>
    %141 = arith.mulf %140, %140 : vector<16x32xf32>
    %cst_70 = arith.constant dense<0.000000e+00> : vector<16xf32>
    %142 = vector.multi_reduction <add>, %141, %cst_70 [1] : vector<16x32xf32> to vector<16xf32>
    %143 = vector.shape_cast %142 : vector<16xf32> to vector<16x1xf32>
    %cst_71 = arith.constant 3.200000e+01 : f32
    %144 = vector.broadcast %cst_71 : f32 to vector<16x1xf32>
    %145 = arith.divf %143, %144 : vector<16x1xf32>
    %146 = vector.broadcast %138 : vector<16x1xf32> to vector<16x32xf32>
    %147 = arith.subf %130, %146 : vector<16x32xf32>
    %cst_72 = arith.constant 9.99999996E-13 : f32
    %148 = vector.broadcast %cst_72 : f32 to vector<16x1xf32>
    %149 = arith.addf %145, %148 : vector<16x1xf32>
    %150 = math.rsqrt %149 : vector<16x1xf32>
    %151 = vector.broadcast %150 : vector<16x1xf32> to vector<16x32xf32>
    %152 = arith.mulf %147, %151 : vector<16x32xf32>
    %153 = vector.broadcast %132 : vector<1x32xf32> to vector<16x32xf32>
    %154 = arith.mulf %152, %153 : vector<16x32xf32>
    %155 = vector.broadcast %134 : vector<1x32xf32> to vector<16x32xf32>
    %156 = arith.addf %154, %155 : vector<16x32xf32>
    %c1 = arith.constant 1 : index
    %c0_73 = arith.constant 0 : index
    %c0_74 = arith.constant 0 : index
    %157 = vector.load %arg4[%c1, %c0_73, %c0_74] : memref<2x32x96xf32, #tpu.memory_space<vmem>>, vector<1x32x96xf32>
    %158 = vector.shape_cast %157 : vector<1x32x96xf32> to vector<32x96xf32>
    %cst_75 = arith.constant dense<0.000000e+00> : vector<16x96xf32>
    %159 = tpu.matmul %156, %158, %cst_75 {dimension_numbers = #tpu.dot_dimension_numbers<[1], [0], [0], [1], [0, 0, 1, 1], [], []>} : vector<16x32xf32>, vector<32x96xf32>, vector<16x96xf32> -> vector<16x96xf32>
    %c1_76 = arith.constant 1 : index
    %c0_77 = arith.constant 0 : index
    %c0_78 = arith.constant 0 : index
    %160 = vector.load %arg5[%c1_76, %c0_77, %c0_78] : memref<2x1x96xf32, #tpu.memory_space<vmem>>, vector<1x1x96xf32>
    %161 = vector.shape_cast %160 : vector<1x1x96xf32> to vector<1x96xf32>
    %162 = vector.broadcast %161 : vector<1x96xf32> to vector<16x96xf32>
    %163 = arith.addf %159, %162 : vector<16x96xf32>
    %164 = vector.extract_strided_slice %163 {offsets = [0, 0], sizes = [16, 32], strides = [1, 1]} : vector<16x96xf32> to vector<16x32xf32>
    %165 = vector.extract_strided_slice %163 {offsets = [0, 32], sizes = [16, 32], strides = [1, 1]} : vector<16x96xf32> to vector<16x32xf32>
    %166 = vector.extract_strided_slice %163 {offsets = [0, 64], sizes = [16, 32], strides = [1, 1]} : vector<16x96xf32> to vector<16x32xf32>
    %167 = vector.extract_strided_slice %164 {offsets = [0, 0], sizes = [16, 16], strides = [1, 1]} : vector<16x32xf32> to vector<16x16xf32>
    %168 = vector.extract_strided_slice %165 {offsets = [0, 0], sizes = [16, 16], strides = [1, 1]} : vector<16x32xf32> to vector<16x16xf32>
    %cst_79 = arith.constant dense<0.000000e+00> : vector<16x16xf32>
    %169 = tpu.matmul %167, %168, %cst_79 {dimension_numbers = #tpu.dot_dimension_numbers<[1], [1], [0], [0], [0, 0, 1, 0], [], []>} : vector<16x16xf32>, vector<16x16xf32>, vector<16x16xf32> -> vector<16x16xf32>
    %170 = arith.addf %169, %25 : vector<16x16xf32>
    %cst_80 = arith.constant dense<0xFF800000> : vector<16xf32>
    %171 = vector.multi_reduction <maximumf>, %170, %cst_80 [1] : vector<16x16xf32> to vector<16xf32>
    %172 = vector.shape_cast %171 : vector<16xf32> to vector<16x1xf32>
    %173 = vector.broadcast %172 : vector<16x1xf32> to vector<16x16xf32>
    %174 = arith.subf %170, %173 : vector<16x16xf32>
    %175 = math.exp %174 : vector<16x16xf32>
    %cst_81 = arith.constant dense<0.000000e+00> : vector<16xf32>
    %176 = vector.multi_reduction <add>, %175, %cst_81 [1] : vector<16x16xf32> to vector<16xf32>
    %177 = vector.shape_cast %176 : vector<16xf32> to vector<16x1xf32>
    %178 = tpu.reciprocal %177 {approx = true} : vector<16x1xf32> -> vector<16x1xf32>
    %179 = vector.broadcast %178 : vector<16x1xf32> to vector<16x16xf32>
    %180 = arith.mulf %175, %179 : vector<16x16xf32>
    %181 = vector.extract_strided_slice %166 {offsets = [0, 0], sizes = [16, 16], strides = [1, 1]} : vector<16x32xf32> to vector<16x16xf32>
    %cst_82 = arith.constant dense<0.000000e+00> : vector<16x16xf32>
    %182 = tpu.matmul %180, %181, %cst_82 {dimension_numbers = #tpu.dot_dimension_numbers<[1], [0], [0], [1], [0, 0, 1, 1], [], []>} : vector<16x16xf32>, vector<16x16xf32>, vector<16x16xf32> -> vector<16x16xf32>
    %183 = vector.extract_strided_slice %164 {offsets = [0, 16], sizes = [16, 16], strides = [1, 1]} : vector<16x32xf32> to vector<16x16xf32>
    %184 = vector.extract_strided_slice %165 {offsets = [0, 16], sizes = [16, 16], strides = [1, 1]} : vector<16x32xf32> to vector<16x16xf32>
    %cst_83 = arith.constant dense<0.000000e+00> : vector<16x16xf32>
    %185 = tpu.matmul %183, %184, %cst_83 {dimension_numbers = #tpu.dot_dimension_numbers<[1], [1], [0], [0], [0, 0, 1, 0], [], []>} : vector<16x16xf32>, vector<16x16xf32>, vector<16x16xf32> -> vector<16x16xf32>
    %186 = arith.addf %185, %25 : vector<16x16xf32>
    %cst_84 = arith.constant dense<0xFF800000> : vector<16xf32>
    %187 = vector.multi_reduction <maximumf>, %186, %cst_84 [1] : vector<16x16xf32> to vector<16xf32>
    %188 = vector.shape_cast %187 : vector<16xf32> to vector<16x1xf32>
    %189 = vector.broadcast %188 : vector<16x1xf32> to vector<16x16xf32>
    %190 = arith.subf %186, %189 : vector<16x16xf32>
    %191 = math.exp %190 : vector<16x16xf32>
    %cst_85 = arith.constant dense<0.000000e+00> : vector<16xf32>
    %192 = vector.multi_reduction <add>, %191, %cst_85 [1] : vector<16x16xf32> to vector<16xf32>
    %193 = vector.shape_cast %192 : vector<16xf32> to vector<16x1xf32>
    %194 = tpu.reciprocal %193 {approx = true} : vector<16x1xf32> -> vector<16x1xf32>
    %195 = vector.broadcast %194 : vector<16x1xf32> to vector<16x16xf32>
    %196 = arith.mulf %191, %195 : vector<16x16xf32>
    %197 = vector.extract_strided_slice %166 {offsets = [0, 16], sizes = [16, 16], strides = [1, 1]} : vector<16x32xf32> to vector<16x16xf32>
    %cst_86 = arith.constant dense<0.000000e+00> : vector<16x16xf32>
    %198 = tpu.matmul %196, %197, %cst_86 {dimension_numbers = #tpu.dot_dimension_numbers<[1], [0], [0], [1], [0, 0, 1, 1], [], []>} : vector<16x16xf32>, vector<16x16xf32>, vector<16x16xf32> -> vector<16x16xf32>
    %199 = tpu.concatenate %182, %198 in 1 : vector<16x16xf32>, vector<16x16xf32> -> vector<16x32xf32>
    %c1_87 = arith.constant 1 : index
    %c0_88 = arith.constant 0 : index
    %c0_89 = arith.constant 0 : index
    %200 = vector.load %arg6[%c1_87, %c0_88, %c0_89] : memref<2x32x32xf32, #tpu.memory_space<vmem>>, vector<1x32x32xf32>
    %201 = vector.shape_cast %200 : vector<1x32x32xf32> to vector<32x32xf32>
    %cst_90 = arith.constant dense<0.000000e+00> : vector<16x32xf32>
    %202 = tpu.matmul %199, %201, %cst_90 {dimension_numbers = #tpu.dot_dimension_numbers<[1], [0], [0], [1], [0, 0, 1, 1], [], []>} : vector<16x32xf32>, vector<32x32xf32>, vector<16x32xf32> -> vector<16x32xf32>
    %c1_91 = arith.constant 1 : index
    %c0_92 = arith.constant 0 : index
    %c0_93 = arith.constant 0 : index
    %203 = vector.load %arg7[%c1_91, %c0_92, %c0_93] : memref<2x1x32xf32, #tpu.memory_space<vmem>>, vector<1x1x32xf32>
    %204 = vector.shape_cast %203 : vector<1x1x32xf32> to vector<1x32xf32>
    %205 = vector.broadcast %204 : vector<1x32xf32> to vector<16x32xf32>
    %206 = arith.addf %202, %205 : vector<16x32xf32>
    %207 = arith.addf %206, %156 : vector<16x32xf32>
    %c1_94 = arith.constant 1 : index
    %c0_95 = arith.constant 0 : index
    %c0_96 = arith.constant 0 : index
    %208 = vector.load %arg8[%c1_94, %c0_95, %c0_96] : memref<2x1x32xf32, #tpu.memory_space<vmem>>, vector<1x1x32xf32>
    %209 = vector.shape_cast %208 : vector<1x1x32xf32> to vector<1x32xf32>
    %c1_97 = arith.constant 1 : index
    %c0_98 = arith.constant 0 : index
    %c0_99 = arith.constant 0 : index
    %210 = vector.load %arg9[%c1_97, %c0_98, %c0_99] : memref<2x1x32xf32, #tpu.memory_space<vmem>>, vector<1x1x32xf32>
    %211 = vector.shape_cast %210 : vector<1x1x32xf32> to vector<1x32xf32>
    %cst_100 = arith.constant dense<0.000000e+00> : vector<16xf32>
    %212 = vector.multi_reduction <add>, %207, %cst_100 [1] : vector<16x32xf32> to vector<16xf32>
    %213 = vector.shape_cast %212 : vector<16xf32> to vector<16x1xf32>
    %cst_101 = arith.constant 3.200000e+01 : f32
    %214 = vector.broadcast %cst_101 : f32 to vector<16x1xf32>
    %215 = arith.divf %213, %214 : vector<16x1xf32>
    %216 = vector.broadcast %215 : vector<16x1xf32> to vector<16x32xf32>
    %217 = arith.subf %207, %216 : vector<16x32xf32>
    %218 = arith.mulf %217, %217 : vector<16x32xf32>
    %cst_102 = arith.constant dense<0.000000e+00> : vector<16xf32>
    %219 = vector.multi_reduction <add>, %218, %cst_102 [1] : vector<16x32xf32> to vector<16xf32>
    %220 = vector.shape_cast %219 : vector<16xf32> to vector<16x1xf32>
    %cst_103 = arith.constant 3.200000e+01 : f32
    %221 = vector.broadcast %cst_103 : f32 to vector<16x1xf32>
    %222 = arith.divf %220, %221 : vector<16x1xf32>
    %223 = vector.broadcast %215 : vector<16x1xf32> to vector<16x32xf32>
    %224 = arith.subf %207, %223 : vector<16x32xf32>
    %cst_104 = arith.constant 9.99999996E-13 : f32
    %225 = vector.broadcast %cst_104 : f32 to vector<16x1xf32>
    %226 = arith.addf %222, %225 : vector<16x1xf32>
    %227 = math.rsqrt %226 : vector<16x1xf32>
    %228 = vector.broadcast %227 : vector<16x1xf32> to vector<16x32xf32>
    %229 = arith.mulf %224, %228 : vector<16x32xf32>
    %230 = vector.broadcast %209 : vector<1x32xf32> to vector<16x32xf32>
    %231 = arith.mulf %229, %230 : vector<16x32xf32>
    %232 = vector.broadcast %211 : vector<1x32xf32> to vector<16x32xf32>
    %233 = arith.addf %231, %232 : vector<16x32xf32>
    %c1_105 = arith.constant 1 : index
    %c0_106 = arith.constant 0 : index
    %c0_107 = arith.constant 0 : index
    %234 = vector.load %arg10[%c1_105, %c0_106, %c0_107] : memref<2x32x64xf32, #tpu.memory_space<vmem>>, vector<1x32x64xf32>
    %235 = vector.shape_cast %234 : vector<1x32x64xf32> to vector<32x64xf32>
    %cst_108 = arith.constant dense<0.000000e+00> : vector<16x64xf32>
    %236 = tpu.matmul %233, %235, %cst_108 {dimension_numbers = #tpu.dot_dimension_numbers<[1], [0], [0], [1], [0, 0, 1, 1], [], []>} : vector<16x32xf32>, vector<32x64xf32>, vector<16x64xf32> -> vector<16x64xf32>
    %c1_109 = arith.constant 1 : index
    %c0_110 = arith.constant 0 : index
    %c0_111 = arith.constant 0 : index
    %237 = vector.load %arg11[%c1_109, %c0_110, %c0_111] : memref<2x1x64xf32, #tpu.memory_space<vmem>>, vector<1x1x64xf32>
    %238 = vector.shape_cast %237 : vector<1x1x64xf32> to vector<1x64xf32>
    %239 = vector.broadcast %238 : vector<1x64xf32> to vector<16x64xf32>
    %240 = arith.addf %236, %239 : vector<16x64xf32>
    %241 = arith.mulf %240, %240 : vector<16x64xf32>
    %242 = arith.mulf %240, %241 : vector<16x64xf32>
    %cst_112 = arith.constant 4.471500e-02 : f32
    %243 = vector.broadcast %cst_112 : f32 to vector<16x64xf32>
    %244 = arith.mulf %243, %242 : vector<16x64xf32>
    %245 = arith.addf %240, %244 : vector<16x64xf32>
    %cst_113 = arith.constant 0.797884583 : f32
    %246 = vector.broadcast %cst_113 : f32 to vector<16x64xf32>
    %247 = arith.mulf %246, %245 : vector<16x64xf32>
    %248 = math.tanh %247 : vector<16x64xf32>
    %cst_114 = arith.constant 1.000000e+00 : f32
    %249 = vector.broadcast %cst_114 : f32 to vector<16x64xf32>
    %250 = arith.addf %249, %248 : vector<16x64xf32>
    %cst_115 = arith.constant 5.000000e-01 : f32
    %251 = vector.broadcast %cst_115 : f32 to vector<16x64xf32>
    %252 = arith.mulf %251, %250 : vector<16x64xf32>
    %253 = arith.mulf %240, %252 : vector<16x64xf32>
    %c1_116 = arith.constant 1 : index
    %c0_117 = arith.constant 0 : index
    %c0_118 = arith.constant 0 : index
    %254 = vector.load %arg12[%c1_116, %c0_117, %c0_118] : memref<2x64x32xf32, #tpu.memory_space<vmem>>, vector<1x64x32xf32>
    %255 = vector.shape_cast %254 : vector<1x64x32xf32> to vector<64x32xf32>
    %cst_119 = arith.constant dense<0.000000e+00> : vector<16x32xf32>
    %256 = tpu.matmul %253, %255, %cst_119 {dimension_numbers = #tpu.dot_dimension_numbers<[1], [0], [0], [1], [0, 0, 1, 1], [], []>} : vector<16x64xf32>, vector<64x32xf32>, vector<16x32xf32> -> vector<16x32xf32>
    %c1_120 = arith.constant 1 : index
    %c0_121 = arith.constant 0 : index
    %c0_122 = arith.constant 0 : index
    %257 = vector.load %arg13[%c1_120, %c0_121, %c0_122] : memref<2x1x32xf32, #tpu.memory_space<vmem>>, vector<1x1x32xf32>
    %258 = vector.shape_cast %257 : vector<1x1x32xf32> to vector<1x32xf32>
    %259 = vector.broadcast %258 : vector<1x32xf32> to vector<16x32xf32>
    %260 = arith.addf %256, %259 : vector<16x32xf32>
    %261 = arith.addf %260, %233 : vector<16x32xf32>
    %c1_123 = arith.constant 1 : index
    %c0_124 = arith.constant 0 : index
    %c0_125 = arith.constant 0 : index
    %262 = vector.load %arg14[%c1_123, %c0_124, %c0_125] : memref<2x1x32xf32, #tpu.memory_space<vmem>>, vector<1x1x32xf32>
    %263 = vector.shape_cast %262 : vector<1x1x32xf32> to vector<1x32xf32>
    %c1_126 = arith.constant 1 : index
    %c0_127 = arith.constant 0 : index
    %c0_128 = arith.constant 0 : index
    %264 = vector.load %arg15[%c1_126, %c0_127, %c0_128] : memref<2x1x32xf32, #tpu.memory_space<vmem>>, vector<1x1x32xf32>
    %265 = vector.shape_cast %264 : vector<1x1x32xf32> to vector<1x32xf32>
    %cst_129 = arith.constant dense<0.000000e+00> : vector<16xf32>
    %266 = vector.multi_reduction <add>, %261, %cst_129 [1] : vector<16x32xf32> to vector<16xf32>
    %267 = vector.shape_cast %266 : vector<16xf32> to vector<16x1xf32>
    %cst_130 = arith.constant 3.200000e+01 : f32
    %268 = vector.broadcast %cst_130 : f32 to vector<16x1xf32>
    %269 = arith.divf %267, %268 : vector<16x1xf32>
    %270 = vector.broadcast %269 : vector<16x1xf32> to vector<16x32xf32>
    %271 = arith.subf %261, %270 : vector<16x32xf32>
    %272 = arith.mulf %271, %271 : vector<16x32xf32>
    %cst_131 = arith.constant dense<0.000000e+00> : vector<16xf32>
    %273 = vector.multi_reduction <add>, %272, %cst_131 [1] : vector<16x32xf32> to vector<16xf32>
    %274 = vector.shape_cast %273 : vector<16xf32> to vector<16x1xf32>
    %cst_132 = arith.constant 3.200000e+01 : f32
    %275 = vector.broadcast %cst_132 : f32 to vector<16x1xf32>
    %276 = arith.divf %274, %275 : vector<16x1xf32>
    %277 = vector.broadcast %269 : vector<16x1xf32> to vector<16x32xf32>
    %278 = arith.subf %261, %277 : vector<16x32xf32>
    %cst_133 = arith.constant 9.99999996E-13 : f32
    %279 = vector.broadcast %cst_133 : f32 to vector<16x1xf32>
    %280 = arith.addf %276, %279 : vector<16x1xf32>
    %281 = math.rsqrt %280 : vector<16x1xf32>
    %282 = vector.broadcast %281 : vector<16x1xf32> to vector<16x32xf32>
    %283 = arith.mulf %278, %282 : vector<16x32xf32>
    %284 = vector.broadcast %263 : vector<1x32xf32> to vector<16x32xf32>
    %285 = arith.mulf %283, %284 : vector<16x32xf32>
    %286 = vector.broadcast %265 : vector<1x32xf32> to vector<16x32xf32>
    %287 = arith.addf %285, %286 : vector<16x32xf32>
    %c0_134 = arith.constant 0 : index
    %c0_135 = arith.constant 0 : index
    %288 = vector.load %arg16[%c0_134, %c0_135] : memref<32x32xf32, #tpu.memory_space<vmem>>, vector<32x32xf32>
    %cst_136 = arith.constant dense<0.000000e+00> : vector<16x32xf32>
    %289 = tpu.matmul %287, %288, %cst_136 {dimension_numbers = #tpu.dot_dimension_numbers<[1], [0], [0], [1], [0, 0, 1, 1], [], []>} : vector<16x32xf32>, vector<32x32xf32>, vector<16x32xf32> -> vector<16x32xf32>
    %c0_137 = arith.constant 0 : index
    %c0_138 = arith.constant 0 : index
    %290 = vector.load %arg17[%c0_137, %c0_138] : memref<1x32xf32, #tpu.memory_space<vmem>>, vector<1x32xf32>
    %291 = vector.broadcast %290 : vector<1x32xf32> to vector<16x32xf32>
    %292 = arith.addf %289, %291 : vector<16x32xf32>
    %293 = math.tanh %292 : vector<16x32xf32>
    %c0_139 = arith.constant 0 : index
    %c0_140 = arith.constant 0 : index
    %294 = vector.load %arg18[%c0_139, %c0_140] : memref<32x128xf32, #tpu.memory_space<vmem>>, vector<32x128xf32>
    %cst_141 = arith.constant dense<0.000000e+00> : vector<16x128xf32>
    %295 = tpu.matmul %293, %294, %cst_141 {dimension_numbers = #tpu.dot_dimension_numbers<[1], [0], [0], [1], [0, 0, 1, 1], [], []>} : vector<16x32xf32>, vector<32x128xf32>, vector<16x128xf32> -> vector<16x128xf32>
    %c0_142 = arith.constant 0 : index
    %c0_143 = arith.constant 0 : index
    %296 = vector.load %arg19[%c0_142, %c0_143] : memref<1x128xf32, #tpu.memory_space<vmem>>, vector<1x128xf32>
    %297 = vector.broadcast %296 : vector<1x128xf32> to vector<16x128xf32>
    %298 = arith.addf %295, %297 : vector<16x128xf32>
    %cst_144 = arith.constant dense<0xFF800000> : vector<16xf32>
    %299 = vector.multi_reduction <maximumf>, %298, %cst_144 [1] : vector<16x128xf32> to vector<16xf32>
    %300 = vector.shape_cast %299 : vector<16xf32> to vector<16x1xf32>
    %301 = vector.broadcast %300 : vector<16x1xf32> to vector<16x128xf32>
    %302 = arith.subf %298, %301 : vector<16x128xf32>
    %303 = math.exp %302 : vector<16x128xf32>
    %cst_145 = arith.constant dense<0.000000e+00> : vector<16xf32>
    %304 = vector.multi_reduction <add>, %303, %cst_145 [1] : vector<16x128xf32> to vector<16xf32>
    %305 = vector.shape_cast %304 : vector<16xf32> to vector<16x1xf32>
    %306 = tpu.reciprocal %305 : vector<16x1xf32> -> vector<16x1xf32>
    %307 = vector.broadcast %306 : vector<16x1xf32> to vector<16x128xf32>
    %308 = arith.mulf %303, %307 : vector<16x128xf32>
    %c0_146 = arith.constant 0 : index
    %c0_147 = arith.constant 0 : index
    %309 = vector.load %arg20[%c0_146, %c0_147] : memref<16x128xf32, #tpu.memory_space<vmem>>, vector<16x128xf32>
    tpu.vector_store %arg20[%c0_146, %c0_147], %308 {strides = array<i32>} : memref<16x128xf32, #tpu.memory_space<vmem>>, vector<16x128xf32>,
    return
  }
}

</mosaic_0001>

<bundles_post_ra>
// kernel: kobert_classifier_forward.1
= control target key start
LH: loop header
LB: loop body
LE: loop exit
PB: predicated region body
PF: predicated region fallthrough
CT: control target
= control target key end

     0   :  { %vm69_vm0 = vcmask 261120   ;;  %vm213_vm1 = vcmask 130048   ;;  %s2747_s28 = smov 80   ;;  %s2749_s29 = smov 112   ;;  %vm879_vm3 = vcmask 523264   ;;  %s3234_s0 = inlined_call_operand.vmem [shape: f32[16,32], index: 0, kind: input, shape index: {}]   ;;  %s3235_s4 = inlined_call_operand.vmem [shape: f32[2,32,96], index: 4, kind: input, shape index: {}]   ;;  %s3236_s2 = inlined_call_operand.vmem [shape: f32[1,32], index: 2, kind: input, shape index: {}]   ;;  %s3237_s3 = inlined_call_operand.vmem [shape: f32[1,32], index: 3, kind: input, shape index: {}]   ;;  %s3238_s5 = inlined_call_operand.vmem [shape: f32[2,1,96], index: 5, kind: input, shape index: {}]   ;;  %s3239_s1 = inlined_call_operand.vmem [shape: f32[16,16], index: 1, kind: input, shape index: {}]   ;;  %s3240_s6 = inlined_call_operand.vmem [shape: f32[2,32,32], index: 6, kind: input, shape index: {}]   ;;  %s3241_s7 = inlined_call_operand.vmem [shape: f32[2,1,32], index: 7, kind: input, shape index: {}]   ;;  %s3242_s10 = inlined_call_operand.vmem [shape: f32[2,32,64], index: 10, kind: input, shape index: {}]   ;;  %s3243_s8 = inlined_call_operand.vmem [shape: f32[2,1,32], index: 8, kind: input, shape index: {}]   ;;  %s3244_s9 = inlined_call_operand.vmem [shape: f32[2,1,32], index: 9, kind: input, shape index: {}]   ;;  %s3245_s12 = inlined_call_operand.vmem [shape: f32[2,64,32], index: 12, kind: input, shape index: {}]   ;;  %s3246_s11 = inlined_call_operand.vmem [shape: f32[2,1,64], index: 11, kind: input, shape index: {}]   ;;  %s3247_s13 = inlined_call_operand.vmem [shape: f32[2,1,32], index: 13, kind: input, shape index: {}]   ;;  %s3248_s14 = inlined_call_operand.vmem [shape: f32[2,1,32], index: 14, kind: input, shape index: {}]   ;;  %s3249_s15 = inlined_call_operand.vmem [shape: f32[2,1,32], index: 15, kind: input, shape index: {}]   ;;  %s3250_s16 = inlined_call_operand.vmem [shape: f32[32,32], index: 16, kind: input, shape index: {}]   ;;  %s3251_s18 = inlined_call_operand.vmem [shape: f32[32,128], index: 18, kind: input, shape index: {}]   ;;  %s3252_s17 = inlined_call_operand.vmem [shape: f32[1,32], index: 17, kind: input, shape index: {}]   ;;  %s3253_s19 = inlined_call_operand.vmem [shape: f32[1,128], index: 19, kind: input, shape index: {}]   ;;  %s3254_s20 = inlined_call_operand.vmem [shape: f32[16,128], index: 20, kind: output, shape index: {}]  }
   0x1   :  { %3258 = sst [smem:[#allocation2_spill]] %s3234_s0  ;;  %vm2908_vm2 = vmpackc.low %vm213_vm1, %vm213_vm1  ;;  %v2926_v53 = vld [vmem:[%s3239_s1 + $0x8] sm:$0xff]  ;;  %v2931_v54 = vld [vmem:[%s3239_s1] sm:$0xff]  ;;  %s2750_s1 = smov 48  }
   0x2   :  { %3259 = sst [smem:[#allocation3_spill]] %s3235_s4  ;;  %s3263_s23 = sld [smem:[#allocation2_spill]] }
   0x3   :  { %3260 = sst [smem:[#allocation4_spill]] %s3236_s2  ;;  %s3264_s26 = sld [smem:[#allocation3_spill]] }
   0x4   :  { %3261 = sst [smem:[#allocation5_spill]] %s3237_s3  ;;  %s3265_s22 = sld [smem:[#allocation4_spill]] }
   0x5   :  { %3262 = sst [smem:[#allocation6_spill]] %s3238_s5  ;;  %s3266_s2 = sld [smem:[#allocation5_spill]] }
   0x6   :  { %s3267_s27 = sld [smem:[#allocation6_spill]]  ;;  %s2748_s5 = smov 96  }
   0x7   :  { %s2752_s4 = smov 16  }
   0x8   :  { %v65_v0 = vld [vmem:[%s3263_s23] sm:$0xff]  ;;  %v66_v1 = vld [vmem:[%s3263_s23 + $0x8] sm:$0xff] }
   0x9   :  { %v70_v2 = vsel %vm69_vm0, %v65_v0, 0.0  ;;  %v73_v3 = vsel %vm69_vm0, %v66_v1, 0.0  ;;  %v115_v14 = vld [vmem:[%s3264_s26] sm:$0xff]  ;;  %v116_v15 = vld [vmem:[%s3264_s26 + $0x8] sm:$0xff]  ;;  %v117_v16 = vld [vmem:[%s3264_s26 + $0x10] sm:$0xff] }
   0xa   :  { %71 = vadd.xlane.f32.xlu0 %v70_v2  ;;  %v2493_v17 = vpack.c.bf16 %v116_v15, %v115_v14  ;;  %v118_v18 = vld [vmem:[%s3264_s26 + $0x18] sm:$0xff]  ;;  %v2119_v27 = vld [vmem:[%s3265_s22] ss:$0 sm:$0xff]  ;;  %s2751_s22 = smov 64  }
   0xb   :  { %v2497_v19 = vpack.c.bf16 %v118_v18, %v117_v16  ;;  %v2120_v29 = vld [vmem:[%s3266_s2] ss:$0 sm:$0xff] }
   0xc   :  { %2494 = vmatprep.subr.bf16.mxu0 %v2493_v17  ;;  %v2121_v36 = vld [vmem:[%s3267_s27] ss:$0 sm:$0xff] }
   0xd   :  { %2496 = vmatpush3.bf16.msra.mxu0 %v2493_v17 }
   0xe   :  { %74 = vadd.xlane.f32.xlu0 %v73_v3  ;;  %2498 = vmatprep.subr.bf16.mxu0 %v2497_v19 }
  0x11   :  { %2500 = vmatpush3.bf16.msra.mxu0 %v2497_v19 }
  0x97   :  { %v72_v4 = vpop.xlane.xlu0 %71 }
  0x98   :  { %v77_v5 = vmul.f32 0.03125, %v72_v4 }
  0x9a   :  { %v79_v6 = vsub.f32 %v65_v0, %v77_v5 }
  0x9b   :  { %v75_v7 = vpop.xlane.xlu0 %74 }
  0x9c   :  { %v78_v8 = vmul.f32 0.03125, %v75_v7  ;;  %v81_v9 = vmul.f32 %v79_v6, %v79_v6 }
  0x9e   :  { %v80_v10 = vsub.f32 %v66_v1, %v78_v8  ;;  %v83_v11 = vsel %vm69_vm0, %v81_v9, 0.0 }
  0x9f   :  { %84 = vadd.xlane.f32.xlu1 %v83_v11 }
  0xa0   :  { %v82_v12 = vmul.f32 %v80_v10, %v80_v10 }
  0xa2   :  { %v86_v13 = vsel %vm69_vm0, %v82_v12, 0.0 }
  0xa3   :  { %87 = vadd.xlane.f32.xlu1 %v86_v13 }
 0x12c   :  { %v85_v20 = vpop.xlane.xlu1 %84 }
 0x12d   :  { %v89_v21 = vmul.f32 0.03125, %v85_v20 }
 0x12f   :  { %v91_v22 = vadd.f32 1e-12, %v89_v21 }
 0x130   :  { %v88_v23 = vpop.xlane.xlu1 %87 }
 0x131   :  { %2675 = vrsqrt.f32 %v91_v22  ;;  %v90_v24 = vmul.f32 0.03125, %v88_v23 }
 0x133   :  { %v92_v25 = vadd.f32 1e-12, %v90_v24 }
 0x135   :  { %2677 = vrsqrt.f32 %v92_v25 }
 0x13b   :  { %v2676_v26 = vpop.eup %2675 }
 0x13c   :  { %v95_v28 = vmul.f32 %v2676_v26, %v79_v6 }
 0x13e   :  { %v103_v30 = vmul.f32 %v2119_v27, %v95_v28 }
 0x13f   :  { %v2678_v31 = vpop.eup %2677 }
 0x140   :  { %v96_v32 = vmul.f32 %v2678_v31, %v80_v10  ;;  %v2886_v33 = vadd.f32 %v2120_v29, %v103_v30 }
 0x142   :  { %v104_v34 = vmul.f32 %v2119_v27, %v96_v32  ;;  %2319 = vmatprep.mubr.msk.f32.mxu0 %vm69_vm0, %v2886_v33 }
 0x144   :  { %v2890_v35 = vadd.f32 %v2120_v29, %v104_v34 }
 0x146   :  { %2320 = vmatmul.mubr.msk.f32.vlgmr.msra.gmra.mrb[0].mxu0 %vm69_vm0, %v2890_v35 }
 0x219   :  { %v2321_v37 = vpop.f32.mrb[0].mxu0 }
 0x21a   :  { %v204_v38 = vadd.f32 %v2321_v37, %v2121_v36  ;;  %v198_v39 = vpop.f32.mrb[1].mxu0 }
 0x21b   :  { %v199_v40 = vadd.f32 %v2121_v36, %v198_v39 }
 0x21d   :  { %2326 = vmatprep.mubr.msk.f32.mxu1 %vm213_vm1, %v199_v40  ;;  %v2898_v41 = vpack.i.bf16 %v204_v38, %v199_v40 }
 0x21f   :  { %2641 = vrot.lane.b32.xlu1 %v2898_v41, %s2747_s28  ;;  %2636 = vrot.lane.b32.xlu0 %v2898_v41, %s2748_s5 }
 0x223   :  { %406 = vrot.lane.b32.xlu1 %v199_v40, %s2749_s29 }
 0x227   :  { %408 = vrot.lane.b32.xlu1 %v204_v38, %s2749_s29 }
 0x291   :  { %v2642_v42 = vpop.permute.xlu1 %2641  ;;  %v2637_v43 = vpop.permute.xlu0 %2636 }
 0x292   :  { %v2644_v44 = vunpack.i.h.bf16 %v2642_v42  ;;  %v2643_v45 = vunpack.i.l.bf16 %v2642_v42  ;;  %v2639_v46 = vunpack.i.h.bf16 %v2637_v43  ;;  %v2638_v47 = vunpack.i.l.bf16 %v2637_v43 }
 0x294   :  { %v2501_v49 = vpack.c.bf16 %v2639_v46, %v2638_v47  ;;  %v2511_v50 = vpack.c.bf16 %v2644_v44, %v2643_v45  ;;  %v616_v45 = vld [vmem:[%s3240_s6] sm:$0xff]  ;;  %v617_v46 = vld [vmem:[%s3240_s6 + $0x8] sm:$0xff] }
 0x295   :  { %v407_v51 = vpop.permute.xlu1 %406  ;;  %v2521_v47 = vpack.c.bf16 %v617_v46, %v616_v45  ;;  %v868_v45 = vld [vmem:[%s3245_s12 + $0x20] sm:$0xff]  ;;  %v869_v46 = vld [vmem:[%s3245_s12 + $0x28] sm:$0xff] }
 0x296   :  { %2503 = vmatprep.subr.msk.bf16.mxu1 %vm2908_vm2, %v2501_v49 }
 0x297   :  { %2506 = vmatpush3.bf16.xpose.msk.msra.mxu1 %vm2908_vm2, %v2501_v49  ;;  %v618_v49 = vld [vmem:[%s3240_s6 + $0x10] sm:$0xff] }
 0x298   :  { %2513 = vmatprep.subr.msk.bf16.mxu1 %vm2908_vm2, %v2511_v50 }
 0x299   :  { %v409_v52 = vpop.permute.xlu1 %408 }
 0x29e   :  { %2327 = vmatmul.mubr.msk.f32.vlgmr.msra.gmra.mrb[0].mxu1 %vm213_vm1, %v204_v38 }
 0x29f   :  { %2516 = vmatpush3.bf16.xpose.msk.msra.mxu1 %vm2908_vm2, %v2511_v50  ;;  %2340 = vmatprep.mubr.msk.f32.mxu1 %vm213_vm1, %v407_v51  ;;  %v619_v50 = vld [vmem:[%s3240_s6 + $0x18] sm:$0xff] }
 0x2a0   :  { %v2525_v51 = vpack.c.bf16 %v619_v50, %v618_v49  ;;  %v870_v49 = vld [vmem:[%s3245_s12 + $0x30] sm:$0xff]  ;;  %v871_v50 = vld [vmem:[%s3245_s12 + $0x38] sm:$0xff] }
 0x2a6   :  { %2341 = vmatmul.mubr.msk.f32.vlgmr.msra.gmra.mrb[2].mxu1 %vm213_vm1, %v409_v52 }
 0x371   :  { %v2328_v55 = vpop.f32.mrb[0].mxu1 }
 0x372   :  { %v294_v56 = vadd.f32 %v2328_v55, %v2926_v53  ;;  %v288_v57 = vpop.f32.mrb[1].mxu1 }
 0x373   :  { %v289_v58 = vadd.f32 %v288_v57, %v2931_v54 }
 0x374   :  { %v300_v59 = vsel %vm213_vm1, %v294_v56, -inf }
 0x375   :  { %301 = vmax.xlane.f32.xlu1 %v300_v59  ;;  %v297_v60 = vsel %vm213_vm1, %v289_v58, -inf }
 0x376   :  { %298 = vmax.xlane.f32.xlu0 %v297_v60 }
 0x379   :  { %v2342_v61 = vpop.f32.mrb[2].mxu1 }
 0x37a   :  { %v488_v62 = vpop.f32.mrb[3].mxu1  ;;  %v494_v0 = vadd.f32 %v2342_v61, %v2926_v53 }
 0x37b   :  { %v489_v63 = vadd.f32 %v488_v62, %v2931_v54  ;;  %v2136_v62 = vld [vmem:[%s3241_s7] ss:$0 sm:$0xff] }
 0x37c   :  { %v500_v2 = vsel %vm213_vm1, %v494_v0, -inf }
 0x37d   :  { %v497_v1 = vsel %vm213_vm1, %v489_v63, -inf }
 0x37e   :  { %498 = vmax.xlane.f32.xlu0 %v497_v1 }
 0x382   :  { %501 = vmax.xlane.f32.xlu0 %v500_v2 }
 0x402   :  { %v302_v3 = vpop.xlane.xlu1 %301 }
 0x403   :  { %v304_v4 = vsub.f32 %v294_v56, %v302_v3  ;;  %v299_v5 = vpop.xlane.xlu0 %298 }
 0x404   :  { %v303_v6 = vsub.f32 %v289_v58, %v299_v5 }
 0x405   :  { %v307_v7 = vmul.f32 1.442695, %v304_v4 }
 0x406   :  { %v305_v8 = vmul.f32 1.442695, %v303_v6 }
 0x407   :  { %2679 = vpow2.f32 %v307_v7 }
 0x408   :  { %2681 = vpow2.f32 %v305_v8 }
 0x40b   :  { %v499_v9 = vpop.xlane.xlu0 %498 }
 0x40c   :  { %v503_v10 = vsub.f32 %v489_v63, %v499_v9 }
 0x40e   :  { %v505_v11 = vmul.f32 1.442695, %v503_v10 }
 0x40f   :  { %v502_v12 = vpop.xlane.xlu0 %501 }
 0x410   :  { %2683 = vpow2.f32 %v505_v11  ;;  %v504_v13 = vsub.f32 %v494_v0, %v502_v12 }
 0x411   :  { %v2680_v14 = vpop.eup %2679 }
 0x412   :  { %v2682_v15 = vpop.eup %2681  ;;  %v507_v16 = vmul.f32 1.442695, %v504_v13  ;;  %v312_v17 = vsel %vm213_vm1, %v2680_v14, 0.0 }
 0x413   :  { %313 = vadd.xlane.f32.xlu1 %v312_v17  ;;  %v309_v18 = vsel %vm213_vm1, %v2682_v15, 0.0 }
 0x414   :  { %2685 = vpow2.f32 %v507_v16  ;;  %310 = vadd.xlane.f32.xlu0 %v309_v18  ;;  %v755_v16 = vld [vmem:[%s3242_s10 + $0x8] sm:$0xff]  ;;  %v756_v18 = vld [vmem:[%s3242_s10 + $0x10] sm:$0xff] }
 0x41a   :  { %v2684_v19 = vpop.eup %2683 }
 0x41b   :  { %v509_v20 = vsel %vm213_vm1, %v2684_v19, 0.0 }
 0x41c   :  { %510 = vadd.xlane.f32.xlu0 %v509_v20 }
 0x41e   :  { %v2686_v21 = vpop.eup %2685 }
 0x41f   :  { %v512_v22 = vsel %vm213_vm1, %v2686_v21, 0.0 }
 0x420   :  { %513 = vadd.xlane.f32.xlu1 %v512_v22 }
 0x431   :  { %2651 = vrot.lane.b32.xlu1 %v2898_v41, %s2750_s1 }
 0x432   :  { %2646 = vrot.lane.b32.xlu0 %v2898_v41, %s2751_s22 }
 0x4a0   :  { %v314_v24 = vpop.xlane.xlu1 %313 }
 0x4a1   :  { %v311_v23 = vpop.xlane.xlu0 %310 }
 0x4a2   :  { %2687 = vrcp.f32 %v311_v23 }
 0x4a3   :  { %2689 = vrcp.f32 %v314_v24 }
 0x4a9   :  { %v511_v25 = vpop.xlane.xlu0 %510 }
 0x4aa   :  { %2691 = vrcp.f32 %v511_v25 }
 0x4ac   :  { %v2688_v26 = vpop.eup %2687 }
 0x4ad   :  { %v514_v27 = vpop.xlane.xlu1 %513  ;;  %v2647_v28 = vpop.permute.xlu0 %2646  ;;  %v317_v29 = vmul.f32 %v2688_v26, %v2682_v15 }
 0x4ae   :  { %2693 = vrcp.f32 %v514_v27  ;;  %v2649_v30 = vunpack.i.h.bf16 %v2647_v28  ;;  %v2648_v31 = vunpack.i.l.bf16 %v2647_v28  ;;  %v2690_v34 = vpop.eup %2689  ;;  %v2139_v28 = vld [vmem:[%s3243_s8] ss:$0 sm:$0xff] }
 0x4af   :  { %2333 = vmatprep.mubr.msk.f32.mxu0 %vm213_vm1, %v317_v29  ;;  %v318_v40 = vmul.f32 %v2690_v34, %v2680_v14 }
 0x4b0   :  { %v2507_v32 = vpack.c.bf16 %v2649_v30, %v2648_v31  ;;  %v2140_v30 = vld [vmem:[%s3244_s9] ss:$0 sm:$0xff] }
 0x4b1   :  { %v2652_v36 = vpop.permute.xlu1 %2651 }
 0x4b2   :  { %v2654_v37 = vunpack.i.h.bf16 %v2652_v36  ;;  %v2653_v38 = vunpack.i.l.bf16 %v2652_v36  ;;  %2508 = vmatprep.subr.bf16.mxu0 %v2507_v32 }
 0x4b3   :  { %2510 = vmatpush3.bf16.msra.mxu0 %v2507_v32 }
 0x4b4   :  { %v2692_v39 = vpop.eup %2691  ;;  %v2517_v41 = vpack.c.bf16 %v2654_v37, %v2653_v38 }
 0x4b5   :  { %v517_v42 = vmul.f32 %v2692_v39, %v2684_v19  ;;  %v757_v19 = vld [vmem:[%s3242_s10 + $0x18] sm:$0xff]  ;;  %v864_v39 = vld [vmem:[%s3245_s12] sm:$0xff] }
 0x4b6   :  { %2334 = vmatmul.mubr.msk.f32.vlgmr.msra.gmra.mrb[2].mxu0 %vm213_vm1, %v318_v40  ;;  %2518 = vmatprep.subr.bf16.mxu0 %v2517_v41  ;;  %v2533_v20 = vpack.c.bf16 %v757_v19, %v756_v18  ;;  %v865_v40 = vld [vmem:[%s3245_s12 + $0x8] sm:$0xff] }
 0x4b7   :  { %2520 = vmatpush3.bf16.msra.mxu0 %v2517_v41  ;;  %2347 = vmatprep.mubr.msk.f32.mxu0 %vm213_vm1, %v517_v42  ;;  %v2537_v41 = vpack.c.bf16 %v865_v40, %v864_v39  ;;  %v866_v42 = vld [vmem:[%s3245_s12 + $0x10] sm:$0xff] }
 0x4b8   :  { %v2694_v43 = vpop.eup %2693  ;;  %2522 = vmatprep.subr.bf16.mxu0 %v2521_v47 }
 0x4b9   :  { %v518_v44 = vmul.f32 %v2694_v43, %v2686_v21  ;;  %v867_v43 = vld [vmem:[%s3245_s12 + $0x18] sm:$0xff] }
 0x4bb   :  { %2348 = vmatmul.mubr.msk.f32.vlgmr.msra.gmra.mrb[4].mxu0 %vm213_vm1, %v518_v44  ;;  %v2541_v44 = vpack.c.bf16 %v867_v43, %v866_v42 }
 0x4bc   :  { %2524 = vmatpush3.bf16.msra.mxu0 %v2521_v47  ;;  %v2545_v47 = vpack.c.bf16 %v869_v46, %v868_v45  ;;  %v2147_v45 = vld [vmem:[%s3248_s14] ss:$0 sm:$0xff] }
 0x4bd   :  { %2526 = vmatprep.subr.bf16.mxu0 %v2525_v51 }
 0x4c0   :  { %2528 = vmatpush3.bf16.msra.mxu0 %v2525_v51  ;;  %v2549_v51 = vpack.c.bf16 %v871_v50, %v870_v49  ;;  %v2148_v50 = vld [vmem:[%s3249_s15] ss:$0 sm:$0xff] }
 0x4c1   :  { %2538 = vmatprep.subr.bf16.mxu0 %v2537_v41 }
 0x589   :  { %v2335_v52 = vpop.f32.mrb[2].mxu0 }
 0x58a   :  { %v397_v55 = vpop.f32.mrb[3].mxu0 }
 0x58e   :  { %v2349_v56 = vpop.f32.mrb[4].mxu0 }
 0x58f   :  { %v597_v57 = vpop.f32.mrb[5].mxu0 }
 0x590   :  { %608 = vrot.lane.b32.xlu1 %v597_v57, %s2752_s4 }
 0x594   :  { %610 = vrot.lane.b32.xlu1 %v2349_v56, %s2752_s4 }
 0x602   :  { %v609_v58 = vpop.permute.xlu1 %608 }
 0x603   :  { %v614_v59 = vsel %vm213_vm1, %v397_v55, %v609_v58 }
 0x604   :  { %2358 = vmatprep.mubr.msk.f32.mxu0 %vm69_vm0, %v614_v59 }
 0x606   :  { %v611_v60 = vpop.permute.xlu1 %610 }
 0x607   :  { %v615_v61 = vsel %vm213_vm1, %v2335_v52, %v611_v60  ;;  %v2141_v52 = vld [vmem:[%s3246_s11] ss:$0 sm:$0xff] }
 0x608   :  { %2359 = vmatmul.mubr.msk.f32.vlgmr.msra.gmra.mrb[6].mxu0 %vm69_vm0, %v615_v61 }
 0x609   :  { %2540 = vmatpush3.bf16.msra.mxu0 %v2537_v41 }
 0x60a   :  { %2542 = vmatprep.subr.bf16.mxu0 %v2541_v44 }
 0x60d   :  { %2544 = vmatpush3.bf16.msra.mxu0 %v2541_v44 }
 0x60e   :  { %2546 = vmatprep.subr.bf16.mxu0 %v2545_v47 }
 0x611   :  { %2548 = vmatpush3.bf16.msra.mxu0 %v2545_v47 }
 0x612   :  { %2550 = vmatprep.subr.bf16.mxu0 %v2549_v51 }
 0x615   :  { %2552 = vmatpush3.bf16.msra.mxu0 %v2549_v51 }
 0x6db   :  { %v2360_v63 = vpop.f32.mrb[6].mxu0 }
 0x6dc   :  { %v705_v0 = vadd.f32 %v2360_v63, %v2136_v62  ;;  %v699_v1 = vpop.f32.mrb[7].mxu0 }
 0x6dd   :  { %v700_v2 = vadd.f32 %v2136_v62, %v699_v1 }
 0x6de   :  { %v709_v3 = vadd.f32 %v705_v0, %v2890_v35 }
 0x6df   :  { %v708_v4 = vadd.f32 %v700_v2, %v2886_v33  ;;  %v754_v33 = vld [vmem:[%s3242_s10] sm:$0xff] }
 0x6e0   :  { %v715_v5 = vsel %vm69_vm0, %v709_v3, 0.0  ;;  %v2529_v17 = vpack.c.bf16 %v755_v16, %v754_v33 }
 0x6e1   :  { %716 = vadd.xlane.f32.xlu1 %v715_v5  ;;  %v712_v6 = vsel %vm69_vm0, %v708_v4, 0.0 }
 0x6e2   :  { %713 = vadd.xlane.f32.xlu0 %v712_v6  ;;  %2530 = vmatprep.subr.bf16.mxu1 %v2529_v17 }
 0x6e3   :  { %2532 = vmatpush3.bf16.msra.mxu1 %v2529_v17 }
 0x6e4   :  { %2534 = vmatprep.subr.bf16.mxu1 %v2533_v20 }
 0x6e7   :  { %2536 = vmatpush3.bf16.msra.mxu1 %v2533_v20 }
 0x76e   :  { %v717_v7 = vpop.xlane.xlu1 %716 }
 0x76f   :  { %v719_v8 = vmul.f32 0.03125, %v717_v7  ;;  %v714_v9 = vpop.xlane.xlu0 %713 }
 0x770   :  { %v718_v10 = vmul.f32 0.03125, %v714_v9 }
 0x771   :  { %v721_v11 = vsub.f32 %v709_v3, %v719_v8 }
 0x772   :  { %v720_v12 = vsub.f32 %v708_v4, %v718_v10 }
 0x773   :  { %v723_v15 = vmul.f32 %v721_v11, %v721_v11 }
 0x774   :  { %v722_v13 = vmul.f32 %v720_v12, %v720_v12 }
 0x775   :  { %v727_v35 = vsel %vm69_vm0, %v723_v15, 0.0 }
 0x776   :  { %v724_v14 = vsel %vm69_vm0, %v722_v13, 0.0  ;;  %v2144_v13 = vld [vmem:[%s3247_s13] ss:$0 sm:$0xff] }
 0x777   :  { %725 = vadd.xlane.f32.xlu0 %v724_v14 }
 0x77b   :  { %728 = vadd.xlane.f32.xlu0 %v727_v35 }
 0x804   :  { %v726_v21 = vpop.xlane.xlu0 %725 }
 0x805   :  { %v730_v22 = vmul.f32 0.03125, %v726_v21 }
 0x807   :  { %v732_v23 = vadd.f32 1e-12, %v730_v22 }
 0x808   :  { %v729_v24 = vpop.xlane.xlu0 %728 }
 0x809   :  { %2695 = vrsqrt.f32 %v732_v23  ;;  %v731_v25 = vmul.f32 0.03125, %v729_v24 }
 0x80b   :  { %v733_v26 = vadd.f32 1e-12, %v731_v25 }
 0x80d   :  { %2697 = vrsqrt.f32 %v733_v26 }
 0x813   :  { %v2696_v27 = vpop.eup %2695 }
 0x814   :  { %v736_v29 = vmul.f32 %v2696_v27, %v720_v12 }
 0x816   :  { %v744_v31 = vmul.f32 %v2139_v28, %v736_v29 }
 0x817   :  { %v2698_v32 = vpop.eup %2697 }
 0x818   :  { %v737_v34 = vmul.f32 %v2698_v32, %v721_v11  ;;  %v752_v36 = vadd.f32 %v2140_v30, %v744_v31  ;;  %v2150_v31 = vld [vmem:[%s3264_s26 + $0x28] sm:$0xff] }
 0x81a   :  { %v745_v37 = vmul.f32 %v2139_v28, %v737_v34  ;;  %2369 = vmatprep.mubr.msk.f32.mxu1 %vm69_vm0, %v752_v36  ;;  %v2151_v34 = vld [vmem:[%s3264_s26 + $0x30] sm:$0xff] }
 0x81c   :  { %v753_v38 = vadd.f32 %v2140_v30, %v745_v37  ;;  %v2149_v30 = vld [vmem:[%s3264_s26 + $0x20] sm:$0xff] }
 0x81d   :  { %v2553_v32 = vpack.c.bf16 %v2150_v31, %v2149_v30 }
 0x81e   :  { %2370 = vmatmul.mubr.msk.f32.vlgmr.msra.gmra.mrb[4].mxu1 %vm69_vm0, %v753_v38 }
 0x81f   :  { %2554 = vmatprep.subr.bf16.mxu1 %v2553_v32 }
 0x820   :  { %2556 = vmatpush3.bf16.msra.mxu1 %v2553_v32 }
 0x8f1   :  { %v2371_v55 = vpop.f32.mrb[4].mxu1 }
 0x8f2   :  { %v843_v56 = vadd.f32 %v2371_v55, %v2141_v52  ;;  %v837_v57 = vpop.f32.mrb[5].mxu1 }
 0x8f3   :  { %v838_v58 = vadd.f32 %v2141_v52, %v837_v57  ;;  %v2154_v57 = vld [vmem:[%s3267_s27 + $0x1] ss:$0 sm:$0xff] }
 0x8f4   :  { %v847_v59 = vmul.f32 %v843_v56, %v843_v56 }
 0x8f5   :  { %v846_v60 = vmul.f32 %v838_v58, %v838_v58 }
 0x8f6   :  { %v849_v61 = vmul.f32 %v847_v59, %v843_v56 }
 0x8f7   :  { %v848_v62 = vmul.f32 %v846_v60, %v838_v58 }
 0x8f8   :  { %v851_v63 = vmul.f32 0.044715, %v849_v61 }
 0x8f9   :  { %v850_v0 = vmul.f32 0.044715, %v848_v62 }
 0x8fa   :  { %v853_v1 = vadd.f32 %v851_v63, %v843_v56 }
 0x8fb   :  { %v852_v2 = vadd.f32 %v850_v0, %v838_v58 }
 0x8fc   :  { %v855_v3 = vmul.f32 0.7978846, %v853_v1 }
 0x8fd   :  { %v854_v4 = vmul.f32 0.7978846, %v852_v2 }
 0x8fe   :  { %2699 = vtanh.f32 %v855_v3 }
 0x8ff   :  { %2701 = vtanh.f32 %v854_v4 }
 0x908   :  { %v2700_v5 = vpop.eup %2699 }
 0x909   :  { %v2702_v6 = vpop.eup %2701  ;;  %v859_v7 = vadd.f32 1.0, %v2700_v5 }
 0x90a   :  { %v858_v8 = vadd.f32 1.0, %v2702_v6 }
 0x90b   :  { %v861_v9 = vmul.f32 0.5, %v859_v7 }
 0x90c   :  { %v860_v10 = vmul.f32 0.5, %v858_v8 }
 0x90d   :  { %v863_v12 = vmul.f32 %v861_v9, %v843_v56 }
 0x90e   :  { %v862_v11 = vmul.f32 %v860_v10, %v838_v58 }
 0x910   :  { %2388 = vmatprep.mubr.msk.f32.mxu0 %vm879_vm3, %v862_v11 }
 0x911   :  { %2389 = vmatmul.mubr.msk.f32.vlgmr.msra.gmra.mrb[8].mxu0 %vm879_vm3, %v863_v12 }
 0x9e4   :  { %v2390_v14 = vpop.f32.mrb[8].mxu0 }
 0x9e5   :  { %v958_v15 = vadd.f32 %v2390_v14, %v2144_v13  ;;  %v952_v35 = vpop.f32.mrb[9].mxu0 }
 0x9e6   :  { %v953_v33 = vadd.f32 %v2144_v13, %v952_v35 }
 0x9e7   :  { %v962_v16 = vadd.f32 %v958_v15, %v753_v38 }
 0x9e8   :  { %v961_v17 = vadd.f32 %v953_v33, %v752_v36  ;;  %v2152_v36 = vld [vmem:[%s3264_s26 + $0x38] sm:$0xff] }
 0x9e9   :  { %v968_v18 = vsel %vm69_vm0, %v962_v16, 0.0  ;;  %v2557_v37 = vpack.c.bf16 %v2152_v36, %v2151_v34 }
 0x9ea   :  { %969 = vadd.xlane.f32.xlu1 %v968_v18  ;;  %v965_v19 = vsel %vm69_vm0, %v961_v17, 0.0 }
 0x9eb   :  { %966 = vadd.xlane.f32.xlu0 %v965_v19  ;;  %2558 = vmatprep.subr.bf16.mxu1 %v2557_v37 }
 0x9ec   :  { %2560 = vmatpush3.bf16.msra.mxu1 %v2557_v37 }
 0xa77   :  { %v970_v20 = vpop.xlane.xlu1 %969 }
 0xa78   :  { %v972_v21 = vmul.f32 0.03125, %v970_v20  ;;  %v967_v22 = vpop.xlane.xlu0 %966 }
 0xa79   :  { %v971_v23 = vmul.f32 0.03125, %v967_v22 }
 0xa7a   :  { %v974_v24 = vsub.f32 %v962_v16, %v972_v21 }
 0xa7b   :  { %v973_v25 = vsub.f32 %v961_v17, %v971_v23 }
 0xa7c   :  { %v976_v26 = vmul.f32 %v974_v24, %v974_v24 }
 0xa7d   :  { %v975_v27 = vmul.f32 %v973_v25, %v973_v25 }
 0xa7e   :  { %v980_v28 = vsel %vm69_vm0, %v976_v26, 0.0 }
 0xa7f   :  { %981 = vadd.xlane.f32.xlu1 %v980_v28  ;;  %v977_v29 = vsel %vm69_vm0, %v975_v27, 0.0 }
 0xa80   :  { %978 = vadd.xlane.f32.xlu0 %v977_v29 }
 0xb0c   :  { %v982_v38 = vpop.xlane.xlu1 %981 }
 0xb0d   :  { %v984_v39 = vmul.f32 0.03125, %v982_v38  ;;  %v979_v40 = vpop.xlane.xlu0 %978 }
 0xb0e   :  { %v983_v41 = vmul.f32 0.03125, %v979_v40 }
 0xb0f   :  { %v986_v42 = vadd.f32 1e-12, %v984_v39 }
 0xb10   :  { %v985_v43 = vadd.f32 1e-12, %v983_v41 }
 0xb11   :  { %2703 = vrsqrt.f32 %v986_v42 }
 0xb12   :  { %2705 = vrsqrt.f32 %v985_v43 }
 0xb1b   :  { %v2704_v44 = vpop.eup %2703 }
 0xb1c   :  { %v2706_v46 = vpop.eup %2705  ;;  %v990_v47 = vmul.f32 %v2704_v44, %v974_v24 }
 0xb1d   :  { %v989_v49 = vmul.f32 %v2706_v46, %v973_v25 }
 0xb1e   :  { %v998_v51 = vmul.f32 %v2147_v45, %v990_v47 }
 0xb1f   :  { %v997_v52 = vmul.f32 %v2147_v45, %v989_v49 }
 0xb20   :  { %v3056_v56 = vadd.f32 %v2148_v50, %v998_v51 }
 0xb21   :  { %v3054_v55 = vadd.f32 %v2148_v50, %v997_v52 }
 0xb23   :  { %2399 = vmatprep.mubr.msk.f32.mxu1 %vm69_vm0, %v3054_v55 }
 0xb24   :  { %2400 = vmatmul.mubr.msk.f32.vlgmr.msra.gmra.mrb[6].mxu1 %vm69_vm0, %v3056_v56 }
 0xbf7   :  { %v2401_v58 = vpop.f32.mrb[6].mxu1 }
 0xbf8   :  { %v1098_v59 = vadd.f32 %v2401_v58, %v2154_v57  ;;  %v1092_v60 = vpop.f32.mrb[7].mxu1 }
 0xbf9   :  { %v1093_v61 = vadd.f32 %v2154_v57, %v1092_v60 }
 0xbfb   :  { %2406 = vmatprep.mubr.msk.f32.mxu1 %vm213_vm1, %v1093_v61  ;;  %v3066_v62 = vpack.i.bf16 %v1098_v59, %v1093_v61 }
 0xbfd   :  { %2661 = vrot.lane.b32.xlu1 %v3066_v62, %s2747_s28  ;;  %2656 = vrot.lane.b32.xlu0 %v3066_v62, %s2748_s5 }
 0xc01   :  { %1299 = vrot.lane.b32.xlu1 %v1093_v61, %s2749_s29 }
 0xc05   :  { %1301 = vrot.lane.b32.xlu1 %v1098_v59, %s2749_s29 }
 0xc6f   :  { %v2662_v63 = vpop.permute.xlu1 %2661  ;;  %v2657_v0 = vpop.permute.xlu0 %2656 }
 0xc70   :  { %v2664_v1 = vunpack.i.h.bf16 %v2662_v63  ;;  %v2663_v2 = vunpack.i.l.bf16 %v2662_v63  ;;  %v2659_v3 = vunpack.i.h.bf16 %v2657_v0  ;;  %v2658_v4 = vunpack.i.l.bf16 %v2657_v0  ;;  %v2169_v63 = vld [vmem:[%s3240_s6 + $0x20] sm:$0xff]  ;;  %v2170_v0 = vld [vmem:[%s3240_s6 + $0x28] sm:$0xff] }
 0xc72   :  { %v2561_v5 = vpack.c.bf16 %v2659_v3, %v2658_v4  ;;  %v2571_v6 = vpack.c.bf16 %v2664_v1, %v2663_v2  ;;  %v2581_v1 = vpack.c.bf16 %v2170_v0, %v2169_v63  ;;  %v2171_v2 = vld [vmem:[%s3240_s6 + $0x30] sm:$0xff]  ;;  %v2172_v3 = vld [vmem:[%s3240_s6 + $0x38] sm:$0xff] }
 0xc73   :  { %v1300_v7 = vpop.permute.xlu1 %1299  ;;  %v2585_v4 = vpack.c.bf16 %v2172_v3, %v2171_v2  ;;  %v2195_v63 = vld [vmem:[%s3245_s12 + $0x70] sm:$0xff]  ;;  %v2196_v0 = vld [vmem:[%s3245_s12 + $0x78] sm:$0xff]  ;;  %v2186_v2 = vld [vmem:[%s3246_s11 + $0x1] ss:$0 sm:$0xff] }
 0xc74   :  { %2563 = vmatprep.subr.msk.bf16.mxu1 %vm2908_vm2, %v2561_v5 }
 0xc75   :  { %2566 = vmatpush3.bf16.xpose.msk.msra.mxu1 %vm2908_vm2, %v2561_v5 }
 0xc76   :  { %2573 = vmatprep.subr.msk.bf16.mxu1 %vm2908_vm2, %v2571_v6 }
 0xc77   :  { %v1302_v8 = vpop.permute.xlu1 %1301 }
 0xc7c   :  { %2407 = vmatmul.mubr.msk.f32.vlgmr.msra.gmra.mrb[8].mxu1 %vm213_vm1, %v1098_v59 }
 0xc7d   :  { %2576 = vmatpush3.bf16.xpose.msk.msra.mxu1 %vm2908_vm2, %v2571_v6  ;;  %2420 = vmatprep.mubr.msk.f32.mxu1 %vm213_vm1, %v1300_v7 }
 0xc84   :  { %2421 = vmatmul.mubr.msk.f32.vlgmr.msra.gmra.mrb[10].mxu1 %vm213_vm1, %v1302_v8 }
 0xd4f   :  { %v2408_v9 = vpop.f32.mrb[8].mxu1 }
 0xd50   :  { %v1187_v10 = vadd.f32 %v2408_v9, %v2926_v53  ;;  %v1181_v11 = vpop.f32.mrb[9].mxu1 }
 0xd51   :  { %v1182_v12 = vadd.f32 %v1181_v11, %v2931_v54 }
 0xd52   :  { %v1193_v13 = vsel %vm213_vm1, %v1187_v10, -inf }
 0xd53   :  { %1194 = vmax.xlane.f32.xlu1 %v1193_v13  ;;  %v1190_v14 = vsel %vm213_vm1, %v1182_v12, -inf  ;;  %v2174_v13 = vld [vmem:[%s3241_s7 + $0x1] ss:$0 sm:$0xff] }
 0xd54   :  { %1191 = vmax.xlane.f32.xlu0 %v1190_v14 }
 0xd57   :  { %v2422_v15 = vpop.f32.mrb[10].mxu1 }
 0xd58   :  { %v1381_v48 = vpop.f32.mrb[11].mxu1  ;;  %v1387_v33 = vadd.f32 %v2422_v15, %v2926_v53 }
 0xd59   :  { %v1382_v35 = vadd.f32 %v1381_v48, %v2931_v54 }
 0xd5a   :  { %v1393_v17 = vsel %vm213_vm1, %v1387_v33, -inf }
 0xd5b   :  { %v1390_v16 = vsel %vm213_vm1, %v1382_v35, -inf }
 0xd5c   :  { %1391 = vmax.xlane.f32.xlu0 %v1390_v16 }
 0xd60   :  { %1394 = vmax.xlane.f32.xlu0 %v1393_v17 }
 0xde0   :  { %v1195_v18 = vpop.xlane.xlu1 %1194 }
 0xde1   :  { %v1197_v19 = vsub.f32 %v1187_v10, %v1195_v18  ;;  %v1192_v20 = vpop.xlane.xlu0 %1191 }
 0xde2   :  { %v1196_v21 = vsub.f32 %v1182_v12, %v1192_v20 }
 0xde3   :  { %v1200_v22 = vmul.f32 1.442695, %v1197_v19 }
 0xde4   :  { %v1198_v23 = vmul.f32 1.442695, %v1196_v21 }
 0xde5   :  { %2707 = vpow2.f32 %v1200_v22 }
 0xde6   :  { %2709 = vpow2.f32 %v1198_v23 }
 0xde9   :  { %v1392_v24 = vpop.xlane.xlu0 %1391 }
 0xdea   :  { %v1396_v25 = vsub.f32 %v1382_v35, %v1392_v24 }
 0xdec   :  { %v1398_v26 = vmul.f32 1.442695, %v1396_v25 }
 0xded   :  { %v1395_v54 = vpop.xlane.xlu0 %1394 }
 0xdee   :  { %2711 = vpow2.f32 %v1398_v26  ;;  %v1397_v53 = vsub.f32 %v1387_v33, %v1395_v54 }
 0xdef   :  { %v2708_v27 = vpop.eup %2707 }
 0xdf0   :  { %v2710_v28 = vpop.eup %2709  ;;  %v1400_v29 = vmul.f32 1.442695, %v1397_v53  ;;  %v1205_v30 = vsel %vm213_vm1, %v2708_v27, 0.0  ;;  %v2182_v53 = vld [vmem:[%s3242_s10 + $0x28] sm:$0xff] }
 0xdf1   :  { %1206 = vadd.xlane.f32.xlu1 %v1205_v30  ;;  %v1202_v31 = vsel %vm213_vm1, %v2710_v28, 0.0 }
 0xdf2   :  { %2713 = vpow2.f32 %v1400_v29  ;;  %1203 = vadd.xlane.f32.xlu0 %v1202_v31  ;;  %v2184_v29 = vld [vmem:[%s3242_s10 + $0x38] sm:$0xff] }
 0xdf8   :  { %v2712_v32 = vpop.eup %2711 }
 0xdf9   :  { %v1402_v34 = vsel %vm213_vm1, %v2712_v32, 0.0 }
 0xdfa   :  { %1403 = vadd.xlane.f32.xlu0 %v1402_v34 }
 0xdfc   :  { %v2714_v36 = vpop.eup %2713 }
 0xdfd   :  { %v1405_v37 = vsel %vm213_vm1, %v2714_v36, 0.0 }
 0xdfe   :  { %1406 = vadd.xlane.f32.xlu1 %v1405_v37 }
 0xe0f   :  { %2671 = vrot.lane.b32.xlu1 %v3066_v62, %s2750_s1 }
 0xe10   :  { %2666 = vrot.lane.b32.xlu0 %v3066_v62, %s2751_s22 }
 0xe7e   :  { %v1207_v39 = vpop.xlane.xlu1 %1206 }
 0xe7f   :  { %v1204_v38 = vpop.xlane.xlu0 %1203 }
 0xe80   :  { %2715 = vrcp.f32 %v1204_v38 }
 0xe81   :  { %2717 = vrcp.f32 %v1207_v39 }
 0xe87   :  { %v1404_v40 = vpop.xlane.xlu0 %1403 }
 0xe88   :  { %2719 = vrcp.f32 %v1404_v40  ;;  %v2179_v40 = vld [vmem:[%s3243_s8 + $0x1] ss:$0 sm:$0xff] }
 0xe8a   :  { %v2716_v41 = vpop.eup %2715 }
 0xe8b   :  { %v1407_v42 = vpop.xlane.xlu1 %1406  ;;  %v2667_v43 = vpop.permute.xlu0 %2666  ;;  %v1210_v44 = vmul.f32 %v2716_v41, %v2710_v28  ;;  %v2183_v28 = vld [vmem:[%s3242_s10 + $0x30] sm:$0xff] }
 0xe8c   :  { %2721 = vrcp.f32 %v1407_v42  ;;  %v2669_v45 = vunpack.i.h.bf16 %v2667_v43  ;;  %v2668_v46 = vunpack.i.l.bf16 %v2667_v43  ;;  %v2718_v49 = vpop.eup %2717  ;;  %v2593_v30 = vpack.c.bf16 %v2184_v29, %v2183_v28  ;;  %v2180_v42 = vld [vmem:[%s3244_s9 + $0x1] ss:$0 sm:$0xff] }
 0xe8d   :  { %2413 = vmatprep.mubr.msk.f32.mxu0 %vm213_vm1, %v1210_v44  ;;  %v1211_v58 = vmul.f32 %v2718_v49, %v2708_v27 }
 0xe8e   :  { %v2567_v47 = vpack.c.bf16 %v2669_v45, %v2668_v46 }
 0xe8f   :  { %v2672_v50 = vpop.permute.xlu1 %2671 }
 0xe90   :  { %v2674_v51 = vunpack.i.h.bf16 %v2672_v50  ;;  %v2673_v52 = vunpack.i.l.bf16 %v2672_v50  ;;  %2568 = vmatprep.subr.bf16.mxu0 %v2567_v47  ;;  %v2189_v50 = vld [vmem:[%s3245_s12 + $0x40] sm:$0xff] }
 0xe91   :  { %2570 = vmatpush3.bf16.msra.mxu0 %v2567_v47 }
 0xe92   :  { %v2720_v57 = vpop.eup %2719  ;;  %v2577_v59 = vpack.c.bf16 %v2674_v51, %v2673_v52  ;;  %v2190_v51 = vld [vmem:[%s3245_s12 + $0x48] sm:$0xff] }
 0xe93   :  { %v1410_v60 = vmul.f32 %v2720_v57, %v2712_v32  ;;  %v2597_v52 = vpack.c.bf16 %v2190_v51, %v2189_v50  ;;  %v2191_v57 = vld [vmem:[%s3245_s12 + $0x50] sm:$0xff] }
 0xe94   :  { %2414 = vmatmul.mubr.msk.f32.vlgmr.msra.gmra.mrb[10].mxu0 %vm213_vm1, %v1211_v58  ;;  %2578 = vmatprep.subr.bf16.mxu0 %v2577_v59  ;;  %v2192_v58 = vld [vmem:[%s3245_s12 + $0x58] sm:$0xff] }
 0xe95   :  { %2580 = vmatpush3.bf16.msra.mxu0 %v2577_v59  ;;  %2427 = vmatprep.mubr.msk.f32.mxu0 %vm213_vm1, %v1410_v60  ;;  %v2601_v59 = vpack.c.bf16 %v2192_v58, %v2191_v57  ;;  %v2193_v60 = vld [vmem:[%s3245_s12 + $0x60] sm:$0xff] }
 0xe96   :  { %v2722_v61 = vpop.eup %2721  ;;  %2582 = vmatprep.subr.bf16.mxu0 %v2581_v1  ;;  %v2203_v57 = vld [vmem:[%s3248_s14 + $0x1] ss:$0 sm:$0xff] }
 0xe97   :  { %v1411_v62 = vmul.f32 %v2722_v61, %v2714_v36  ;;  %v2194_v61 = vld [vmem:[%s3245_s12 + $0x68] sm:$0xff] }
 0xe99   :  { %2428 = vmatmul.mubr.msk.f32.vlgmr.msra.gmra.mrb[12].mxu0 %vm213_vm1, %v1411_v62  ;;  %v2605_v62 = vpack.c.bf16 %v2194_v61, %v2193_v60  ;;  %v2204_v61 = vld [vmem:[%s3249_s15 + $0x1] ss:$0 sm:$0xff] }
 0xe9a   :  { %2584 = vmatpush3.bf16.msra.mxu0 %v2581_v1  ;;  %v2609_v1 = vpack.c.bf16 %v2196_v0, %v2195_v63 }
 0xe9b   :  { %2586 = vmatprep.subr.bf16.mxu0 %v2585_v4 }
 0xe9e   :  { %2588 = vmatpush3.bf16.msra.mxu0 %v2585_v4 }
 0xe9f   :  { %2598 = vmatprep.subr.bf16.mxu0 %v2597_v52 }
 0xf67   :  { %v2415_v5 = vpop.f32.mrb[10].mxu0 }
 0xf68   :  { %v1290_v6 = vpop.f32.mrb[11].mxu0 }
 0xf6c   :  { %v2429_v7 = vpop.f32.mrb[12].mxu0 }
 0xf6d   :  { %v1490_v8 = vpop.f32.mrb[13].mxu0 }
 0xf6e   :  { %1501 = vrot.lane.b32.xlu1 %v1490_v8, %s2752_s4 }
 0xf72   :  { %1503 = vrot.lane.b32.xlu1 %v2429_v7, %s2752_s4 }
 0xfe0   :  { %v1502_v9 = vpop.permute.xlu1 %1501 }
 0xfe1   :  { %v1507_v10 = vsel %vm213_vm1, %v1290_v6, %v1502_v9 }
 0xfe2   :  { %2438 = vmatprep.mubr.msk.f32.mxu0 %vm69_vm0, %v1507_v10 }
 0xfe4   :  { %v1504_v11 = vpop.permute.xlu1 %1503 }
 0xfe5   :  { %v1508_v12 = vsel %vm213_vm1, %v2415_v5, %v1504_v11 }
 0xfe6   :  { %2439 = vmatmul.mubr.msk.f32.vlgmr.msra.gmra.mrb[14].mxu0 %vm69_vm0, %v1508_v12 }
 0xfe7   :  { %2600 = vmatpush3.bf16.msra.mxu0 %v2597_v52 }
 0xfe8   :  { %2602 = vmatprep.subr.bf16.mxu0 %v2601_v59 }
 0xfeb   :  { %2604 = vmatpush3.bf16.msra.mxu0 %v2601_v59 }
 0xfec   :  { %2606 = vmatprep.subr.bf16.mxu0 %v2605_v62 }
 0xfef   :  { %2608 = vmatpush3.bf16.msra.mxu0 %v2605_v62 }
 0xff0   :  { %2610 = vmatprep.subr.bf16.mxu0 %v2609_v1 }
 0xff3   :  { %2612 = vmatpush3.bf16.msra.mxu0 %v2609_v1 }
0x10b9   :  { %v2440_v14 = vpop.f32.mrb[14].mxu0 }
0x10ba   :  { %v1600_v15 = vadd.f32 %v2440_v14, %v2174_v13  ;;  %v1594_v48 = vpop.f32.mrb[15].mxu0 }
0x10bb   :  { %v1595_v35 = vadd.f32 %v2174_v13, %v1594_v48 }
0x10bc   :  { %v1604_v33 = vadd.f32 %v1600_v15, %v3056_v56 }
0x10bd   :  { %v1603_v16 = vadd.f32 %v1595_v35, %v3054_v55  ;;  %v2181_v55 = vld [vmem:[%s3242_s10 + $0x20] sm:$0xff] }
0x10be   :  { %v1612_v17 = vsel %vm69_vm0, %v1604_v33, 0.0  ;;  %v2589_v27 = vpack.c.bf16 %v2182_v53, %v2181_v55 }
0x10bf   :  { %1613 = vadd.xlane.f32.xlu1 %v1612_v17  ;;  %v1609_v18 = vsel %vm69_vm0, %v1603_v16, 0.0 }
0x10c0   :  { %1610 = vadd.xlane.f32.xlu0 %v1609_v18  ;;  %2590 = vmatprep.subr.bf16.mxu1 %v2589_v27 }
0x10c1   :  { %2592 = vmatpush3.bf16.msra.mxu1 %v2589_v27 }
0x10c2   :  { %2594 = vmatprep.subr.bf16.mxu1 %v2593_v30 }
0x10c5   :  { %2596 = vmatpush3.bf16.msra.mxu1 %v2593_v30 }
0x114c   :  { %v1614_v19 = vpop.xlane.xlu1 %1613 }
0x114d   :  { %v1616_v20 = vmul.f32 0.03125, %v1614_v19  ;;  %v1611_v21 = vpop.xlane.xlu0 %1610 }
0x114e   :  { %v1615_v22 = vmul.f32 0.03125, %v1611_v21 }
0x114f   :  { %v1618_v23 = vsub.f32 %v1604_v33, %v1616_v20 }
0x1150   :  { %v1617_v24 = vsub.f32 %v1603_v16, %v1615_v22  ;;  %v2198_v22 = vld [vmem:[%s3247_s13 + $0x1] ss:$0 sm:$0xff] }
0x1151   :  { %v1620_v54 = vmul.f32 %v1618_v23, %v1618_v23 }
0x1152   :  { %v1619_v25 = vmul.f32 %v1617_v24, %v1617_v24 }
0x1153   :  { %v1624_v56 = vsel %vm69_vm0, %v1620_v54, 0.0 }
0x1154   :  { %v1621_v26 = vsel %vm69_vm0, %v1619_v25, 0.0 }
0x1155   :  { %1622 = vadd.xlane.f32.xlu0 %v1621_v26 }
0x1159   :  { %1625 = vadd.xlane.f32.xlu0 %v1624_v56 }
0x11e2   :  { %v1623_v31 = vpop.xlane.xlu0 %1622 }
0x11e3   :  { %v1627_v32 = vmul.f32 0.03125, %v1623_v31 }
0x11e5   :  { %v1629_v34 = vadd.f32 1e-12, %v1627_v32 }
0x11e6   :  { %v1626_v36 = vpop.xlane.xlu0 %1625 }
0x11e7   :  { %2723 = vrsqrt.f32 %v1629_v34  ;;  %v1628_v37 = vmul.f32 0.03125, %v1626_v36 }
0x11e9   :  { %v1630_v38 = vadd.f32 1e-12, %v1628_v37 }
0x11eb   :  { %2725 = vrsqrt.f32 %v1630_v38 }
0x11f1   :  { %v2724_v39 = vpop.eup %2723 }
0x11f2   :  { %v1633_v41 = vmul.f32 %v2724_v39, %v1617_v24  ;;  %v1909_v39 = vld [vmem:[%s3250_s16] sm:$0xff] }
0x11f4   :  { %v1641_v43 = vmul.f32 %v2179_v40, %v1633_v41 }
0x11f5   :  { %v2726_v44 = vpop.eup %2725 }
0x11f6   :  { %v1634_v45 = vmul.f32 %v2726_v44, %v1618_v23  ;;  %v1649_v46 = vadd.f32 %v2180_v42, %v1641_v43  ;;  %v1912_v43 = vld [vmem:[%s3250_s16 + $0x18] sm:$0xff] }
0x11f8   :  { %v1642_v47 = vmul.f32 %v2179_v40, %v1634_v45  ;;  %2449 = vmatprep.mubr.msk.f32.mxu1 %vm69_vm0, %v1649_v46  ;;  %v1910_v40 = vld [vmem:[%s3250_s16 + $0x8] sm:$0xff] }
0x11f9   :  { %v2613_v41 = vpack.c.bf16 %v1910_v40, %v1909_v39 }
0x11fa   :  { %v1650_v49 = vadd.f32 %v2180_v42, %v1642_v47  ;;  %v1911_v42 = vld [vmem:[%s3250_s16 + $0x10] sm:$0xff] }
0x11fb   :  { %2614 = vmatprep.subr.bf16.mxu1 %v2613_v41  ;;  %v2617_v44 = vpack.c.bf16 %v1912_v43, %v1911_v42 }
0x11fc   :  { %2450 = vmatmul.mubr.msk.f32.vlgmr.msra.gmra.mrb[12].mxu1 %vm69_vm0, %v1650_v49 }
0x11fd   :  { %2616 = vmatpush3.bf16.msra.mxu1 %v2613_v41 }
0x11fe   :  { %2618 = vmatprep.subr.bf16.mxu1 %v2617_v44 }
0x1201   :  { %2620 = vmatpush3.bf16.msra.mxu1 %v2617_v44 }
0x12cf   :  { %v2451_v3 = vpop.f32.mrb[12].mxu1 }
0x12d0   :  { %v1742_v4 = vadd.f32 %v2451_v3, %v2186_v2  ;;  %v1736_v5 = vpop.f32.mrb[13].mxu1  ;;  %v2004_v3 = vld [vmem:[%s3251_s18 + $0x8] sm:$0xff] }
0x12d1   :  { %v1737_v6 = vadd.f32 %v2186_v2, %v1736_v5  ;;  %v2003_v2 = vld [vmem:[%s3251_s18] sm:$0xff] }
0x12d2   :  { %v1746_v7 = vmul.f32 %v1742_v4, %v1742_v4  ;;  %v2621_v5 = vpack.c.bf16 %v2004_v3, %v2003_v2 }
0x12d3   :  { %v1745_v8 = vmul.f32 %v1737_v6, %v1737_v6 }
0x12d4   :  { %v1748_v9 = vmul.f32 %v1746_v7, %v1742_v4  ;;  %2622 = vmatprep.subr.bf16.mxu1 %v2621_v5 }
0x12d5   :  { %v1747_v10 = vmul.f32 %v1745_v8, %v1737_v6  ;;  %v2205_v8 = vld [vmem:[%s3252_s17] ss:$0 sm:$0xff] }
0x12d6   :  { %v1750_v11 = vmul.f32 0.044715, %v1748_v9 }
0x12d7   :  { %v1749_v12 = vmul.f32 0.044715, %v1747_v10 }
0x12d8   :  { %v1752_v13 = vadd.f32 %v1750_v11, %v1742_v4 }
0x12d9   :  { %v1751_v14 = vadd.f32 %v1749_v12, %v1737_v6 }
0x12da   :  { %v1754_v15 = vmul.f32 0.7978846, %v1752_v13 }
0x12db   :  { %v1753_v48 = vmul.f32 0.7978846, %v1751_v14 }
0x12dc   :  { %2727 = vtanh.f32 %v1754_v15  ;;  %v2208_v15 = vld [vmem:[%s3253_s19] ss:$0 sm:$0xff] }
0x12dd   :  { %2729 = vtanh.f32 %v1753_v48 }
0x12e6   :  { %v2728_v35 = vpop.eup %2727 }
0x12e7   :  { %v2730_v33 = vpop.eup %2729  ;;  %v1758_v16 = vadd.f32 1.0, %v2728_v35 }
0x12e8   :  { %v1757_v17 = vadd.f32 1.0, %v2730_v33 }
0x12e9   :  { %v1760_v18 = vmul.f32 0.5, %v1758_v16 }
0x12ea   :  { %v1759_v19 = vmul.f32 0.5, %v1757_v17 }
0x12eb   :  { %v1762_v21 = vmul.f32 %v1760_v18, %v1742_v4  ;;  %v2005_v4 = vld [vmem:[%s3251_s18 + $0x10] sm:$0xff] }
0x12ec   :  { %v1761_v20 = vmul.f32 %v1759_v19, %v1737_v6  ;;  %v2006_v6 = vld [vmem:[%s3251_s18 + $0x18] sm:$0xff] }
0x12ed   :  { %v2625_v7 = vpack.c.bf16 %v2006_v6, %v2005_v4 }
0x12ee   :  { %2468 = vmatprep.mubr.msk.f32.mxu0 %vm879_vm3, %v1761_v20 }
0x12ef   :  { %2469 = vmatmul.mubr.msk.f32.vlgmr.msra.gmra.mrb[16].mxu0 %vm879_vm3, %v1762_v21 }
0x13c2   :  { %v2470_v23 = vpop.f32.mrb[16].mxu0 }
0x13c3   :  { %v1858_v24 = vadd.f32 %v2470_v23, %v2198_v22  ;;  %v1852_v25 = vpop.f32.mrb[17].mxu0 }
0x13c4   :  { %v1853_v26 = vadd.f32 %v2198_v22, %v1852_v25 }
0x13c5   :  { %v1862_v54 = vadd.f32 %v1858_v24, %v1650_v49 }
0x13c6   :  { %v1861_v56 = vadd.f32 %v1853_v26, %v1649_v46 }
0x13c7   :  { %v1870_v55 = vsel %vm69_vm0, %v1862_v54, 0.0 }
0x13c8   :  { %1871 = vadd.xlane.f32.xlu1 %v1870_v55  ;;  %v1867_v53 = vsel %vm69_vm0, %v1861_v56, 0.0 }
0x13c9   :  { %1868 = vadd.xlane.f32.xlu0 %v1867_v53 }
0x1455   :  { %v1872_v27 = vpop.xlane.xlu1 %1871 }
0x1456   :  { %v1874_v28 = vmul.f32 0.03125, %v1872_v27  ;;  %v1869_v29 = vpop.xlane.xlu0 %1868 }
0x1457   :  { %v1873_v30 = vmul.f32 0.03125, %v1869_v29 }
0x1458   :  { %v1876_v31 = vsub.f32 %v1862_v54, %v1874_v28 }
0x1459   :  { %v1875_v32 = vsub.f32 %v1861_v56, %v1873_v30 }
0x145a   :  { %v1878_v34 = vmul.f32 %v1876_v31, %v1876_v31 }
0x145b   :  { %v1877_v36 = vmul.f32 %v1875_v32, %v1875_v32 }
0x145c   :  { %v1882_v37 = vsel %vm69_vm0, %v1878_v34, 0.0 }
0x145d   :  { %1883 = vadd.xlane.f32.xlu1 %v1882_v37  ;;  %v1879_v38 = vsel %vm69_vm0, %v1877_v36, 0.0 }
0x145e   :  { %1880 = vadd.xlane.f32.xlu0 %v1879_v38 }
0x14ea   :  { %v1884_v45 = vpop.xlane.xlu1 %1883 }
0x14eb   :  { %v1886_v46 = vmul.f32 0.03125, %v1884_v45  ;;  %v1881_v47 = vpop.xlane.xlu0 %1880 }
0x14ec   :  { %v1885_v49 = vmul.f32 0.03125, %v1881_v47 }
0x14ed   :  { %v1888_v50 = vadd.f32 1e-12, %v1886_v46 }
0x14ee   :  { %v1887_v51 = vadd.f32 1e-12, %v1885_v49 }
0x14ef   :  { %2731 = vrsqrt.f32 %v1888_v50 }
0x14f0   :  { %2733 = vrsqrt.f32 %v1887_v51 }
0x14f9   :  { %v2732_v52 = vpop.eup %2731 }
0x14fa   :  { %v2734_v58 = vpop.eup %2733  ;;  %v1892_v59 = vmul.f32 %v2732_v52, %v1876_v31 }
0x14fb   :  { %v1891_v60 = vmul.f32 %v2734_v58, %v1875_v32 }
0x14fc   :  { %v1900_v62 = vmul.f32 %v2203_v57, %v1892_v59 }
0x14fd   :  { %v1899_v63 = vmul.f32 %v2203_v57, %v1891_v60 }
0x14fe   :  { %v1908_v1 = vadd.f32 %v2204_v61, %v1900_v62 }
0x14ff   :  { %v1907_v0 = vadd.f32 %v2204_v61, %v1899_v63 }
0x1501   :  { %2479 = vmatprep.mubr.msk.f32.mxu1 %vm69_vm0, %v1907_v0 }
0x1502   :  { %2480 = vmatmul.mubr.msk.f32.vlgmr.msra.gmra.mrb[14].mxu1 %vm69_vm0, %v1908_v1 }
0x1503   :  { %2624 = vmatpush3.bf16.msra.mxu1 %v2621_v5 }
0x1504   :  { %2626 = vmatprep.subr.bf16.mxu1 %v2625_v7 }
0x1507   :  { %2628 = vmatpush3.bf16.msra.mxu1 %v2625_v7 }
0x15d5   :  { %v2481_v9 = vpop.f32.mrb[14].mxu1 }
0x15d6   :  { %v1998_v10 = vadd.f32 %v2481_v9, %v2205_v8  ;;  %v1992_v11 = vpop.f32.mrb[15].mxu1 }
0x15d7   :  { %v1993_v12 = vadd.f32 %v2205_v8, %v1992_v11 }
0x15d9   :  { %2735 = vtanh.f32 %v1993_v12 }
0x15da   :  { %2737 = vtanh.f32 %v1998_v10 }
0x15e3   :  { %v2736_v13 = vpop.eup %2735 }
0x15e4   :  { %v2738_v14 = vpop.eup %2737  ;;  %2490 = vmatprep.mubr.msk.f32.mxu1 %vm69_vm0, %v2736_v13 }
0x15e5   :  { %2491 = vmatmul.mubr.msk.f32.vlgmr.msra.gmra.mrb[16].mxu1 %vm69_vm0, %v2738_v14 }
0x16b8   :  { %v2492_v48 = vpop.f32.mrb[16].mxu1 }
0x16b9   :  { %v2092_v35 = vadd.f32 %v2492_v48, %v2208_v15  ;;  %v2086_v33 = vpop.f32.mrb[17].mxu1 }
0x16ba   :  { %v2087_v16 = vadd.f32 %v2208_v15, %v2086_v33 }
0x16bb   :  { %2097 = vmax.xlane.f32.xlu1 %v2092_v35 }
0x16bc   :  { %2095 = vmax.xlane.f32.xlu0 %v2087_v16 }
0x1748   :  { %v2098_v17 = vpop.xlane.xlu1 %2097 }
0x1749   :  { %v2100_v18 = vsub.f32 %v2092_v35, %v2098_v17  ;;  %v2096_v19 = vpop.xlane.xlu0 %2095 }
0x174a   :  { %v2099_v20 = vsub.f32 %v2087_v16, %v2096_v19 }
0x174b   :  { %v2103_v21 = vmul.f32 1.442695, %v2100_v18 }
0x174c   :  { %v2101_v22 = vmul.f32 1.442695, %v2099_v20 }
0x174d   :  { %2739 = vpow2.f32 %v2103_v21 }
0x174e   :  { %2741 = vpow2.f32 %v2101_v22 }
0x1757   :  { %v2740_v23 = vpop.eup %2739 }
0x1758   :  { %v2742_v24 = vpop.eup %2741  ;;  %2107 = vadd.xlane.f32.xlu1 %v2740_v23 }
0x1759   :  { %2105 = vadd.xlane.f32.xlu0 %v2742_v24 }
0x17e5   :  { %v2108_v25 = vpop.xlane.xlu1 %2107 }
0x17e6   :  { %2743 = vrcp.f32 %v2108_v25  ;;  %v2106_v26 = vpop.xlane.xlu0 %2105 }
0x17e7   :  { %2745 = vrcp.f32 %v2106_v26 }
0x17f0   :  { %v2744_v54 = vpop.eup %2743 }
0x17f1   :  { %v2746_v56 = vpop.eup %2745  ;;  %v2112_v55 = vmul.f32 %v2744_v54, %v2740_v23 }
0x17f2   :  { %v2111_v53 = vmul.f32 %v2746_v56, %v2742_v24 }
0x17f3   :  { %2114 = vst [vmem:[%s3254_s20 + $0x8] sm:$0xff] %v2112_v55 }
0x17f4   :  { %2113 = vst [vmem:[%s3254_s20] sm:$0xff] %v2111_v53 }

</bundles_post_ra>
